<compile_context>
chip_gen: v6e
topology: v6e:2x2x1
jax: 0.10.0
libtpu: 0.0.40
codegen_flags: <defaults>
</compile_context>

<pallas_src>
import functools

import numpy as np
import jax
import jax.numpy as jnp
from jax.experimental import pallas as pl
from jax.experimental.pallas import tpu as pltpu

# ----------------------------- config (small, deterministic) -----------------------------
VOCAB = 256
HIDDEN = 64
NUM_HEADS = 4
HEAD_SIZE = HIDDEN // NUM_HEADS        # 16
INTERMEDIATE = 256
NUM_LAYERS = 2
ROTARY_PCT = 0.25
ROTARY_DIM = int(HEAD_SIZE * ROTARY_PCT)   # 4 (even)
ROPE_THETA = 10000.0
LN_EPS = 1e-5
USE_PARALLEL_RESIDUAL = True
SEQ = 8

# MXU-native operand dtype (accumulation stays f32 everywhere).
MXU_DTYPE = jnp.bfloat16


def _mxu_dot(a, b):
    """MXU matmul with bf16 operands and f32 accumulation."""
    return jnp.dot(a.astype(MXU_DTYPE), b.astype(MXU_DTYPE),
                   preferred_element_type=jnp.float32)


def _layernorm(x, g, b, eps):
    # single-pass stats: var = E[x^2] - E[x]^2 (two independent reductions)
    mu = jnp.mean(x, axis=-1, keepdims=True)
    ex2 = jnp.mean(x * x, axis=-1, keepdims=True)
    var = ex2 - mu * mu
    return (x - mu) * jax.lax.rsqrt(var + eps) * g + b


def _gelu(y):
    # TODO(synk): HF/PyTorch GPT-NeoX default GELU is the exact erf form; tanh
    # approximation is used because erf lowering on Mosaic is not guaranteed.
    return 0.5 * y * (1.0 + jnp.tanh(0.7978845608028654 * (y + 0.044715 * y * y * y)))


# ----------------------------- whole-forward fused kernel -----------------------------
def _fwd_kernel(ids_ref, cos2_ref, sin2_ref, bias_ref,
                embed_ref, rot2_ref,
                ln1_g_ref, ln1_b_ref, ln2_g_ref, ln2_b_ref,
                w_qkv_ref, b_qkv_ref, w_dense_ref, b_dense_ref,
                w_h4h_ref, b_h4h_ref, w_4hh_ref, b_4hh_ref,
                fin_g_ref, fin_b_ref, w_out_ref,
                hid_ref, logits_ref, *,
                num_layers, num_heads, head_size, eps, parallel_residual):
    T = ids_ref.shape[0]
    nh = num_heads
    hs = head_size
    H = nh * hs
    vocab = embed_ref.shape[0]

    # ---- embedding (VocabParallelEmbedding) as a one-hot MXU matmul ----
    ids = ids_ref[...]                                                     # (T, 1) int32
    onehot = (jax.lax.broadcasted_iota(jnp.int32, (T, vocab), 1) == ids)
    h = jnp.dot(onehot.astype(jnp.float32), embed_ref[...],
                preferred_element_type=jnp.float32)                        # (T, H)

    cos2 = cos2_ref[...]                                                   # (T, 2H)
    sin2 = sin2_ref[...]                                                   # (T, 2H)
    bias = bias_ref[...]                                                   # (nh*T, nh*T)
    rot2 = rot2_ref[...]                                                   # (2H, 2H) bf16

    for l in range(num_layers):                                            # static unroll
        # ---- attention branch: LN1 + QKV + RoPE + block-diag causal attention + dense ----
        attn_in = _layernorm(h, ln1_g_ref[l], ln1_b_ref[l], eps)
        qkv = _mxu_dot(attn_in, w_qkv_ref[l]) + b_qkv_ref[l]               # (T, 3H)

        qk = qkv[:, :2 * H]                                                # (T, 2H) q|k
        v = qkv[:, 2 * H:]                                                 # (T, H)
        # NeoX rotate-half via one MXU matmul against a signed permutation matrix;
        # cos/sin already tiled to full width (pass-through dims have cos=1, sin=0).
        rot = jnp.dot(qk.astype(MXU_DTYPE), rot2,
                      preferred_element_type=jnp.float32)
        qk = qk * cos2 + rot * sin2
        q = qk[:, :H]
        k = qk[:, H:]

        # stack heads along sublanes -> (nh*T, hs); one block-diagonal attention
        q_s = jnp.concatenate([q[:, i * hs:(i + 1) * hs] for i in range(nh)], axis=0)
        k_s = jnp.concatenate([k[:, i * hs:(i + 1) * hs] for i in range(nh)], axis=0)
        v_s = jnp.concatenate([v[:, i * hs:(i + 1) * hs] for i in range(nh)], axis=0)

        # NT matmul: MXU consumes the transposed K operand directly (no kh.T)
        s = jax.lax.dot_general(q_s.astype(MXU_DTYPE), k_s.astype(MXU_DTYPE),
                                (((1,), (1,)), ((), ())),
                                preferred_element_type=jnp.float32)        # (nh*T, nh*T)
        s = s + bias                                                       # causal + head-block mask
        m = jnp.max(s, axis=-1, keepdims=True)
        p = jnp.exp(s - m)
        p = p * pl.reciprocal(jnp.sum(p, axis=-1, keepdims=True), approx=True)
        o_s = _mxu_dot(p, v_s)                                             # (nh*T, hs)
        attn = jnp.concatenate([o_s[i * T:(i + 1) * T, :] for i in range(nh)],
                               axis=1)                                     # (T, H)
        attn_out = _mxu_dot(attn, w_dense_ref[l]) + b_dense_ref[l]

        # ---- MLP branch + residual adds ----
        if parallel_residual:
            mlp_in = _layernorm(h, ln2_g_ref[l], ln2_b_ref[l], eps)
        else:
            attn_out = attn_out + h
            mlp_in = _layernorm(attn_out, ln2_g_ref[l], ln2_b_ref[l], eps)

        mlp_h = _gelu(_mxu_dot(mlp_in, w_h4h_ref[l]) + b_h4h_ref[l])
        mlp_out = _mxu_dot(mlp_h, w_4hh_ref[l]) + b_4hh_ref[l]

        if parallel_residual:
            h = mlp_out + attn_out + h
        else:
            h = mlp_out + attn_out

    # ---- final LayerNorm + LM head (ParallelLMHead, no bias) ----
    y = _layernorm(h, fin_g_ref[...], fin_b_ref[...], eps)
    hid_ref[...] = y.astype(hid_ref.dtype)
    logits_ref[...] = _mxu_dot(y, w_out_ref[...]).astype(logits_ref.dtype)


# ----------------------------- trace-time constant tables -----------------------------
def rope_tables(positions):
    """cos/sin tiled to full (T, 2*HIDDEN) width for joint q|k RoPE; pass-through dims
    get cos=1, sin=0."""
    T = positions.shape[0]
    half = ROTARY_DIM // 2
    inv_freq = 1.0 / (ROPE_THETA ** (jnp.arange(0, ROTARY_DIM, 2, dtype=jnp.float32)
                                     / ROTARY_DIM))
    ang = positions.astype(jnp.float32)[:, None] * inv_freq[None, :]       # (T, half)
    cos = jnp.cos(ang)
    sin = jnp.sin(ang)
    pad = HEAD_SIZE - ROTARY_DIM
    cos_h = jnp.concatenate([cos, cos, jnp.ones((T, pad), jnp.float32)], axis=-1)
    sin_h = jnp.concatenate([sin, sin, jnp.zeros((T, pad), jnp.float32)], axis=-1)
    cos2 = jnp.tile(cos_h, (1, 2 * NUM_HEADS))                             # (T, 2H)
    sin2 = jnp.tile(sin_h, (1, 2 * NUM_HEADS))
    return cos2, sin2


def build_attn_bias(T):
    """Additive mask for block-diagonal (per-head) causal attention on (nh*T, nh*T)."""
    n = NUM_HEADS * T
    r = np.arange(n)
    same_head = (r[:, None] // T) == (r[None, :] // T)
    causal = (r[None, :] % T) <= (r[:, None] % T)
    bias = np.where(same_head & causal, 0.0, -1e30).astype(np.float32)
    return jnp.asarray(bias)


def build_rot_matrix():
    """Signed block-diagonal permutation implementing NeoX rotate-half on [q|k]."""
    half = ROTARY_DIM // 2
    R = np.zeros((HEAD_SIZE, HEAD_SIZE), np.float32)
    for i in range(half):
        R[i + half, i] = -1.0      # rot[i]        = -x[i + half]
        R[i, i + half] = 1.0       # rot[i + half] =  x[i]
    RH = np.kron(np.eye(NUM_HEADS, dtype=np.float32), R)                   # (H, H)
    R2 = np.kron(np.eye(2, dtype=np.float32), RH)                          # (2H, 2H) for q|k
    return jnp.asarray(R2).astype(MXU_DTYPE)


# ----------------------------- parameter init -----------------------------
def init_params(key):
    def nrm(k, shape, scale=0.02):
        return scale * jax.random.normal(k, shape, dtype=jnp.float32)

    keys = jax.random.split(key, 4 + NUM_LAYERS)
    scale = HEAD_SIZE ** -0.5

    layers = {name: [] for name in
              ["ln1_g", "ln1_b", "ln2_g", "ln2_b", "w_qkv", "b_qkv",
               "w_dense", "b_dense", "w_h4h", "b_h4h", "w_4hh", "b_4hh"]}
    for i in range(NUM_LAYERS):
        lk = jax.random.split(keys[4 + i], 8)
        # torch nn.Linear weights are (out, in); pre-transpose ONCE to (in, out).
        # vLLM QKVParallelLinear packs output columns as [Q_all | K_all | V_all]
        # (load_weights permutes HF's per-head interleaved layout into this).
        w_qkv = nrm(lk[0], (3 * HIDDEN, HIDDEN)).T                         # (H, 3H)
        b_qkv = nrm(lk[1], (3 * HIDDEN,))
        # fold 1/sqrt(head_size) attention scale into the Q columns (free at runtime)
        w_qkv = w_qkv.at[:, :HIDDEN].multiply(scale)
        b_qkv = b_qkv.at[:HIDDEN].multiply(scale)

        layers["ln1_g"].append(jnp.ones((1, HIDDEN), jnp.float32))
        layers["ln1_b"].append(jnp.zeros((1, HIDDEN), jnp.float32))
        layers["ln2_g"].append(jnp.ones((1, HIDDEN), jnp.float32))
        layers["ln2_b"].append(jnp.zeros((1, HIDDEN), jnp.float32))
        layers["w_qkv"].append(w_qkv.astype(MXU_DTYPE))
        layers["b_qkv"].append(b_qkv.reshape(1, -1))
        layers["w_dense"].append(nrm(lk[2], (HIDDEN, HIDDEN)).T.astype(MXU_DTYPE))
        layers["b_dense"].append(nrm(lk[3], (HIDDEN,)).reshape(1, -1))
        layers["w_h4h"].append(nrm(lk[4], (INTERMEDIATE, HIDDEN)).T.astype(MXU_DTYPE))
        layers["b_h4h"].append(nrm(lk[5], (INTERMEDIATE,)).reshape(1, -1))
        layers["w_4hh"].append(nrm(lk[6], (HIDDEN, INTERMEDIATE)).T.astype(MXU_DTYPE))
        layers["b_4hh"].append(nrm(lk[7], (HIDDEN,)).reshape(1, -1))

    params = {
        "embed_in": nrm(keys[0], (VOCAB, HIDDEN)),                         # (V, H) f32
        # ParallelLMHead (untied): generated in torch (out,in), transposed ONCE.
        "embed_out_t": nrm(keys[1], (VOCAB, HIDDEN)).T.astype(MXU_DTYPE),  # (H, V)
        "final_ln_g": jnp.ones((1, HIDDEN), jnp.float32),
        "final_ln_b": jnp.zeros((1, HIDDEN), jnp.float32),
        "rot2": build_rot_matrix(),                                        # (2H, 2H)
    }
    for name, vals in layers.items():
        params[name] = jnp.stack(vals, axis=0)                             # (L, ...)
    return params


# ----------------------------- model forward -----------------------------
def _cost_estimate(T, args):
    H, I, V, L = HIDDEN, INTERMEDIATE, VOCAB, NUM_LAYERS
    nT, hs = NUM_HEADS * T, HEAD_SIZE
    per_layer = (2 * T * H * 3 * H + 2 * T * (2 * H) * (2 * H)
                 + 2 * nT * hs * nT + 2 * nT * nT * hs
                 + 2 * T * H * H + 2 * T * H * I + 2 * T * I * H)
    flops = 2 * T * V * H + L * per_layer + 2 * T * H * V
    transcendentals = L * (nT * nT + T * I)
    bytes_in = sum(int(np.prod(a.shape)) * a.dtype.itemsize for a in args)
    bytes_out = T * H * 4 + T * V * 4
    return pl.CostEstimate(flops=flops, transcendentals=transcendentals,
                           bytes_accessed=bytes_in + bytes_out)


@jax.jit
def gpt_neox_forward(params, input_ids, positions):
    T = input_ids.shape[0]
    ids2d = input_ids.reshape(T, 1).astype(jnp.int32)
    cos2, sin2 = rope_tables(positions)
    attn_bias = build_attn_bias(T)

    kernel = functools.partial(
        _fwd_kernel, num_layers=NUM_LAYERS, num_heads=NUM_HEADS,
        head_size=HEAD_SIZE, eps=LN_EPS, parallel_residual=USE_PARALLEL_RESIDUAL)

    args = (ids2d, cos2, sin2, attn_bias,
            params["embed_in"], params["rot2"],
            params["ln1_g"], params["ln1_b"], params["ln2_g"], params["ln2_b"],
            params["w_qkv"], params["b_qkv"], params["w_dense"], params["b_dense"],
            params["w_h4h"], params["b_h4h"], params["w_4hh"], params["b_4hh"],
            params["final_ln_g"], params["final_ln_b"], params["embed_out_t"])

    vmem_spec = pl.BlockSpec(memory_space=pltpu.MemorySpace.VMEM)
    # TODO(synk): at production T/HIDDEN this single-call whole-array design must become
    # a grid with real BlockSpec tiling (>=256-wide MXU tiles on v6e/v7x, 128 on v5e,
    # shrink the K tile first under v7x's 64 MiB VMEM, mark the token axis "parallel").
    hidden, logits = pl.pallas_call(
        kernel,
        out_shape=(jax.ShapeDtypeStruct((T, HIDDEN), jnp.float32),
                   jax.ShapeDtypeStruct((T, VOCAB), jnp.float32)),
        in_specs=[vmem_spec] * len(args),
        out_specs=(vmem_spec, vmem_spec),
        cost_estimate=_cost_estimate(T, args),
        compiler_params=pltpu.CompilerParams(vmem_limit_bytes=32 * 1024 * 1024),
    )(*args)
    return hidden, logits


# ----------------------------- main -----------------------------
if __name__ == "__main__":
    key = jax.random.PRNGKey(0)
    pkey, ikey = jax.random.split(key)
    params = init_params(pkey)

    input_ids = jax.random.randint(ikey, (SEQ,), 0, VOCAB, dtype=jnp.int32)
    positions = jnp.arange(SEQ, dtype=jnp.int32)

    hidden_states, logits = gpt_neox_forward(params, input_ids, positions)
    jax.block_until_ready((hidden_states, logits))

    assert hidden_states.shape == (SEQ, HIDDEN)
    assert logits.shape == (SEQ, VOCAB)
    assert bool(jnp.all(jnp.isfinite(hidden_states)))
    assert bool(jnp.all(jnp.isfinite(logits)))
    print("KERNEL_OK")
</pallas_src>

<mosaic_0001>
module attributes {stable_mosaic.version = 11 : i64} {
  func.func @_fwd_kernel(%arg0: memref<8x1xi32, #tpu.memory_space<vmem>>, %arg1: memref<8x128xf32, #tpu.memory_space<vmem>>, %arg2: memref<8x128xf32, #tpu.memory_space<vmem>>, %arg3: memref<32x32xf32, #tpu.memory_space<vmem>>, %arg4: memref<256x64xf32, #tpu.memory_space<vmem>>, %arg5: memref<128x128xbf16, #tpu.memory_space<vmem>>, %arg6: memref<2x1x64xf32, #tpu.memory_space<vmem>>, %arg7: memref<2x1x64xf32, #tpu.memory_space<vmem>>, %arg8: memref<2x1x64xf32, #tpu.memory_space<vmem>>, %arg9: memref<2x1x64xf32, #tpu.memory_space<vmem>>, %arg10: memref<2x64x192xbf16, #tpu.memory_space<vmem>>, %arg11: memref<2x1x192xf32, #tpu.memory_space<vmem>>, %arg12: memref<2x64x64xbf16, #tpu.memory_space<vmem>>, %arg13: memref<2x1x64xf32, #tpu.memory_space<vmem>>, %arg14: memref<2x64x256xbf16, #tpu.memory_space<vmem>>, %arg15: memref<2x1x256xf32, #tpu.memory_space<vmem>>, %arg16: memref<2x256x64xbf16, #tpu.memory_space<vmem>>, %arg17: memref<2x1x64xf32, #tpu.memory_space<vmem>>, %arg18: memref<1x64xf32, #tpu.memory_space<vmem>>, %arg19: memref<1x64xf32, #tpu.memory_space<vmem>>, %arg20: memref<64x256xbf16, #tpu.memory_space<vmem>>, %arg21: memref<8x64xf32, #tpu.memory_space<vmem>>, %arg22: memref<8x256xf32, #tpu.memory_space<vmem>>) attributes {dimension_semantics = [], scalar_prefetch = 0 : i64, scratch_operands = 0 : i64, tpu.core_type = #tpu.core_type<tc>} {
    %c0 = arith.constant 0 : index
    %c0_0 = arith.constant 0 : index
    %0 = vector.load %arg0[%c0, %c0_0] : memref<8x1xi32, #tpu.memory_space<vmem>>, vector<8x1xi32>
    %1 = tpu.iota {dimensions = array<i32: 1>} : vector<8x256xi32>
    %2 = vector.broadcast %0 : vector<8x1xi32> to vector<8x256xi32>
    %3 = arith.cmpi eq, %1, %2 : vector<8x256xi32>
    %4 = arith.extui %3 : vector<8x256xi1> to vector<8x256xi32>
    %5 = arith.sitofp %4 : vector<8x256xi32> to vector<8x256xf32>
    %c0_1 = arith.constant 0 : index
    %c0_2 = arith.constant 0 : index
    %6 = vector.load %arg4[%c0_1, %c0_2] : memref<256x64xf32, #tpu.memory_space<vmem>>, vector<256x64xf32>
    %cst = arith.constant dense<0.000000e+00> : vector<8x64xf32>
    %7 = tpu.matmul %5, %6, %cst {dimension_numbers = #tpu.dot_dimension_numbers<[1], [0], [0], [1], [0, 0, 1, 1], [], []>} : vector<8x256xf32>, vector<256x64xf32>, vector<8x64xf32> -> vector<8x64xf32>
    %c0_3 = arith.constant 0 : index
    %c0_4 = arith.constant 0 : index
    %8 = vector.load %arg1[%c0_3, %c0_4] : memref<8x128xf32, #tpu.memory_space<vmem>>, vector<8x128xf32>
    %c0_5 = arith.constant 0 : index
    %c0_6 = arith.constant 0 : index
    %9 = vector.load %arg2[%c0_5, %c0_6] : memref<8x128xf32, #tpu.memory_space<vmem>>, vector<8x128xf32>
    %c0_7 = arith.constant 0 : index
    %c0_8 = arith.constant 0 : index
    %10 = vector.load %arg3[%c0_7, %c0_8] : memref<32x32xf32, #tpu.memory_space<vmem>>, vector<32x32xf32>
    %c0_9 = arith.constant 0 : index
    %c0_10 = arith.constant 0 : index
    %11 = vector.load %arg5[%c0_9, %c0_10] : memref<128x128xbf16, #tpu.memory_space<vmem>>, vector<128x128xbf16>
    %c0_11 = arith.constant 0 : index
    %c0_12 = arith.constant 0 : index
    %c0_13 = arith.constant 0 : index
    %12 = vector.load %arg6[%c0_11, %c0_12, %c0_13] : memref<2x1x64xf32, #tpu.memory_space<vmem>>, vector<1x1x64xf32>
    %13 = vector.shape_cast %12 : vector<1x1x64xf32> to vector<1x64xf32>
    %c0_14 = arith.constant 0 : index
    %c0_15 = arith.constant 0 : index
    %c0_16 = arith.constant 0 : index
    %14 = vector.load %arg7[%c0_14, %c0_15, %c0_16] : memref<2x1x64xf32, #tpu.memory_space<vmem>>, vector<1x1x64xf32>
    %15 = vector.shape_cast %14 : vector<1x1x64xf32> to vector<1x64xf32>
    %cst_17 = arith.constant dense<0.000000e+00> : vector<8xf32>
    %16 = vector.multi_reduction <add>, %7, %cst_17 [1] : vector<8x64xf32> to vector<8xf32>
    %17 = vector.shape_cast %16 : vector<8xf32> to vector<8x1xf32>
    %cst_18 = arith.constant 6.400000e+01 : f32
    %18 = vector.broadcast %cst_18 : f32 to vector<8x1xf32>
    %19 = arith.divf %17, %18 : vector<8x1xf32>
    %20 = arith.mulf %7, %7 : vector<8x64xf32>
    %cst_19 = arith.constant dense<0.000000e+00> : vector<8xf32>
    %21 = vector.multi_reduction <add>, %20, %cst_19 [1] : vector<8x64xf32> to vector<8xf32>
    %22 = vector.shape_cast %21 : vector<8xf32> to vector<8x1xf32>
    %cst_20 = arith.constant 6.400000e+01 : f32
    %23 = vector.broadcast %cst_20 : f32 to vector<8x1xf32>
    %24 = arith.divf %22, %23 : vector<8x1xf32>
    %25 = arith.mulf %19, %19 : vector<8x1xf32>
    %26 = arith.subf %24, %25 : vector<8x1xf32>
    %27 = vector.broadcast %19 : vector<8x1xf32> to vector<8x64xf32>
    %28 = arith.subf %7, %27 : vector<8x64xf32>
    %cst_21 = arith.constant 9.99999974E-6 : f32
    %29 = vector.broadcast %cst_21 : f32 to vector<8x1xf32>
    %30 = arith.addf %26, %29 : vector<8x1xf32>
    %31 = math.rsqrt %30 : vector<8x1xf32>
    %32 = vector.broadcast %31 : vector<8x1xf32> to vector<8x64xf32>
    %33 = arith.mulf %28, %32 : vector<8x64xf32>
    %34 = vector.broadcast %13 : vector<1x64xf32> to vector<8x64xf32>
    %35 = arith.mulf %33, %34 : vector<8x64xf32>
    %36 = vector.broadcast %15 : vector<1x64xf32> to vector<8x64xf32>
    %37 = arith.addf %35, %36 : vector<8x64xf32>
    %c0_22 = arith.constant 0 : index
    %c0_23 = arith.constant 0 : index
    %c0_24 = arith.constant 0 : index
    %38 = vector.load %arg10[%c0_22, %c0_23, %c0_24] : memref<2x64x192xbf16, #tpu.memory_space<vmem>>, vector<1x64x192xbf16>
    %39 = vector.shape_cast %38 : vector<1x64x192xbf16> to vector<64x192xbf16>
    %40 = arith.truncf %37 : vector<8x64xf32> to vector<8x64xbf16>
    %cst_25 = arith.constant dense<0.000000e+00> : vector<8x192xf32>
    %41 = tpu.matmul %40, %39, %cst_25 {dimension_numbers = #tpu.dot_dimension_numbers<[1], [0], [0], [1], [0, 0, 1, 1], [], []>} : vector<8x64xbf16>, vector<64x192xbf16>, vector<8x192xf32> -> vector<8x192xf32>
    %c0_26 = arith.constant 0 : index
    %c0_27 = arith.constant 0 : index
    %c0_28 = arith.constant 0 : index
    %42 = vector.load %arg11[%c0_26, %c0_27, %c0_28] : memref<2x1x192xf32, #tpu.memory_space<vmem>>, vector<1x1x192xf32>
    %43 = vector.shape_cast %42 : vector<1x1x192xf32> to vector<1x192xf32>
    %44 = vector.broadcast %43 : vector<1x192xf32> to vector<8x192xf32>
    %45 = arith.addf %41, %44 : vector<8x192xf32>
    %46 = vector.extract_strided_slice %45 {offsets = [0, 0], sizes = [8, 128], strides = [1, 1]} : vector<8x192xf32> to vector<8x128xf32>
    %47 = vector.extract_strided_slice %45 {offsets = [0, 128], sizes = [8, 64], strides = [1, 1]} : vector<8x192xf32> to vector<8x64xf32>
    %48 = arith.truncf %46 : vector<8x128xf32> to vector<8x128xbf16>
    %cst_29 = arith.constant dense<0.000000e+00> : vector<8x128xf32>
    %49 = tpu.matmul %48, %11, %cst_29 {dimension_numbers = #tpu.dot_dimension_numbers<[1], [0], [0], [1], [0, 0, 1, 1], [], []>} : vector<8x128xbf16>, vector<128x128xbf16>, vector<8x128xf32> -> vector<8x128xf32>
    %50 = arith.mulf %46, %8 : vector<8x128xf32>
    %51 = arith.mulf %49, %9 : vector<8x128xf32>
    %52 = arith.addf %50, %51 : vector<8x128xf32>
    %53 = vector.extract_strided_slice %52 {offsets = [0, 0], sizes = [8, 64], strides = [1, 1]} : vector<8x128xf32> to vector<8x64xf32>
    %54 = vector.extract_strided_slice %52 {offsets = [0, 64], sizes = [8, 64], strides = [1, 1]} : vector<8x128xf32> to vector<8x64xf32>
    %55 = vector.extract_strided_slice %53 {offsets = [0, 0], sizes = [8, 16], strides = [1, 1]} : vector<8x64xf32> to vector<8x16xf32>
    %56 = vector.extract_strided_slice %53 {offsets = [0, 16], sizes = [8, 16], strides = [1, 1]} : vector<8x64xf32> to vector<8x16xf32>
    %57 = vector.extract_strided_slice %53 {offsets = [0, 32], sizes = [8, 16], strides = [1, 1]} : vector<8x64xf32> to vector<8x16xf32>
    %58 = vector.extract_strided_slice %53 {offsets = [0, 48], sizes = [8, 16], strides = [1, 1]} : vector<8x64xf32> to vector<8x16xf32>
    %59 = tpu.concatenate %55, %56, %57, %58 in 0 : vector<8x16xf32>, vector<8x16xf32>, vector<8x16xf32>, vector<8x16xf32> -> vector<32x16xf32>
    %60 = vector.extract_strided_slice %54 {offsets = [0, 0], sizes = [8, 16], strides = [1, 1]} : vector<8x64xf32> to vector<8x16xf32>
    %61 = vector.extract_strided_slice %54 {offsets = [0, 16], sizes = [8, 16], strides = [1, 1]} : vector<8x64xf32> to vector<8x16xf32>
    %62 = vector.extract_strided_slice %54 {offsets = [0, 32], sizes = [8, 16], strides = [1, 1]} : vector<8x64xf32> to vector<8x16xf32>
    %63 = vector.extract_strided_slice %54 {offsets = [0, 48], sizes = [8, 16], strides = [1, 1]} : vector<8x64xf32> to vector<8x16xf32>
    %64 = tpu.concatenate %60, %61, %62, %63 in 0 : vector<8x16xf32>, vector<8x16xf32>, vector<8x16xf32>, vector<8x16xf32> -> vector<32x16xf32>
    %65 = vector.extract_strided_slice %47 {offsets = [0, 0], sizes = [8, 16], strides = [1, 1]} : vector<8x64xf32> to vector<8x16xf32>
    %66 = vector.extract_strided_slice %47 {offsets = [0, 16], sizes = [8, 16], strides = [1, 1]} : vector<8x64xf32> to vector<8x16xf32>
    %67 = vector.extract_strided_slice %47 {offsets = [0, 32], sizes = [8, 16], strides = [1, 1]} : vector<8x64xf32> to vector<8x16xf32>
    %68 = vector.extract_strided_slice %47 {offsets = [0, 48], sizes = [8, 16], strides = [1, 1]} : vector<8x64xf32> to vector<8x16xf32>
    %69 = tpu.concatenate %65, %66, %67, %68 in 0 : vector<8x16xf32>, vector<8x16xf32>, vector<8x16xf32>, vector<8x16xf32> -> vector<32x16xf32>
    %70 = arith.truncf %59 : vector<32x16xf32> to vector<32x16xbf16>
    %71 = arith.truncf %64 : vector<32x16xf32> to vector<32x16xbf16>
    %cst_30 = arith.constant dense<0.000000e+00> : vector<32x32xf32>
    %72 = tpu.matmul %70, %71, %cst_30 {dimension_numbers = #tpu.dot_dimension_numbers<[1], [1], [0], [0], [0, 0, 1, 0], [], []>} : vector<32x16xbf16>, vector<32x16xbf16>, vector<32x32xf32> -> vector<32x32xf32>
    %73 = arith.addf %72, %10 : vector<32x32xf32>
    %cst_31 = arith.constant dense<0xFF800000> : vector<32xf32>
    %74 = vector.multi_reduction <maximumf>, %73, %cst_31 [1] : vector<32x32xf32> to vector<32xf32>
    %75 = vector.shape_cast %74 : vector<32xf32> to vector<32x1xf32>
    %76 = vector.broadcast %75 : vector<32x1xf32> to vector<32x32xf32>
    %77 = arith.subf %73, %76 : vector<32x32xf32>
    %78 = math.exp %77 : vector<32x32xf32>
    %cst_32 = arith.constant dense<0.000000e+00> : vector<32xf32>
    %79 = vector.multi_reduction <add>, %78, %cst_32 [1] : vector<32x32xf32> to vector<32xf32>
    %80 = vector.shape_cast %79 : vector<32xf32> to vector<32x1xf32>
    %81 = tpu.reciprocal %80 {approx = true} : vector<32x1xf32> -> vector<32x1xf32>
    %82 = vector.broadcast %81 : vector<32x1xf32> to vector<32x32xf32>
    %83 = arith.mulf %78, %82 : vector<32x32xf32>
    %84 = arith.truncf %83 : vector<32x32xf32> to vector<32x32xbf16>
    %85 = arith.truncf %69 : vector<32x16xf32> to vector<32x16xbf16>
    %cst_33 = arith.constant dense<0.000000e+00> : vector<32x16xf32>
    %86 = tpu.matmul %84, %85, %cst_33 {dimension_numbers = #tpu.dot_dimension_numbers<[1], [0], [0], [1], [0, 0, 1, 1], [], []>} : vector<32x32xbf16>, vector<32x16xbf16>, vector<32x16xf32> -> vector<32x16xf32>
    %87 = vector.extract_strided_slice %86 {offsets = [0, 0], sizes = [8, 16], strides = [1, 1]} : vector<32x16xf32> to vector<8x16xf32>
    %88 = vector.extract_strided_slice %86 {offsets = [8, 0], sizes = [8, 16], strides = [1, 1]} : vector<32x16xf32> to vector<8x16xf32>
    %89 = vector.extract_strided_slice %86 {offsets = [16, 0], sizes = [8, 16], strides = [1, 1]} : vector<32x16xf32> to vector<8x16xf32>
    %90 = vector.extract_strided_slice %86 {offsets = [24, 0], sizes = [8, 16], strides = [1, 1]} : vector<32x16xf32> to vector<8x16xf32>
    %91 = tpu.concatenate %87, %88, %89, %90 in 1 : vector<8x16xf32>, vector<8x16xf32>, vector<8x16xf32>, vector<8x16xf32> -> vector<8x64xf32>
    %c0_34 = arith.constant 0 : index
    %c0_35 = arith.constant 0 : index
    %c0_36 = arith.constant 0 : index
    %92 = vector.load %arg12[%c0_34, %c0_35, %c0_36] : memref<2x64x64xbf16, #tpu.memory_space<vmem>>, vector<1x64x64xbf16>
    %93 = vector.shape_cast %92 : vector<1x64x64xbf16> to vector<64x64xbf16>
    %94 = arith.truncf %91 : vector<8x64xf32> to vector<8x64xbf16>
    %cst_37 = arith.constant dense<0.000000e+00> : vector<8x64xf32>
    %95 = tpu.matmul %94, %93, %cst_37 {dimension_numbers = #tpu.dot_dimension_numbers<[1], [0], [0], [1], [0, 0, 1, 1], [], []>} : vector<8x64xbf16>, vector<64x64xbf16>, vector<8x64xf32> -> vector<8x64xf32>
    %c0_38 = arith.constant 0 : index
    %c0_39 = arith.constant 0 : index
    %c0_40 = arith.constant 0 : index
    %96 = vector.load %arg13[%c0_38, %c0_39, %c0_40] : memref<2x1x64xf32, #tpu.memory_space<vmem>>, vector<1x1x64xf32>
    %97 = vector.shape_cast %96 : vector<1x1x64xf32> to vector<1x64xf32>
    %98 = vector.broadcast %97 : vector<1x64xf32> to vector<8x64xf32>
    %99 = arith.addf %95, %98 : vector<8x64xf32>
    %c0_41 = arith.constant 0 : index
    %c0_42 = arith.constant 0 : index
    %c0_43 = arith.constant 0 : index
    %100 = vector.load %arg8[%c0_41, %c0_42, %c0_43] : memref<2x1x64xf32, #tpu.memory_space<vmem>>, vector<1x1x64xf32>
    %101 = vector.shape_cast %100 : vector<1x1x64xf32> to vector<1x64xf32>
    %c0_44 = arith.constant 0 : index
    %c0_45 = arith.constant 0 : index
    %c0_46 = arith.constant 0 : index
    %102 = vector.load %arg9[%c0_44, %c0_45, %c0_46] : memref<2x1x64xf32, #tpu.memory_space<vmem>>, vector<1x1x64xf32>
    %103 = vector.shape_cast %102 : vector<1x1x64xf32> to vector<1x64xf32>
    %cst_47 = arith.constant dense<0.000000e+00> : vector<8xf32>
    %104 = vector.multi_reduction <add>, %7, %cst_47 [1] : vector<8x64xf32> to vector<8xf32>
    %105 = vector.shape_cast %104 : vector<8xf32> to vector<8x1xf32>
    %cst_48 = arith.constant 6.400000e+01 : f32
    %106 = vector.broadcast %cst_48 : f32 to vector<8x1xf32>
    %107 = arith.divf %105, %106 : vector<8x1xf32>
    %108 = arith.mulf %7, %7 : vector<8x64xf32>
    %cst_49 = arith.constant dense<0.000000e+00> : vector<8xf32>
    %109 = vector.multi_reduction <add>, %108, %cst_49 [1] : vector<8x64xf32> to vector<8xf32>
    %110 = vector.shape_cast %109 : vector<8xf32> to vector<8x1xf32>
    %cst_50 = arith.constant 6.400000e+01 : f32
    %111 = vector.broadcast %cst_50 : f32 to vector<8x1xf32>
    %112 = arith.divf %110, %111 : vector<8x1xf32>
    %113 = arith.mulf %107, %107 : vector<8x1xf32>
    %114 = arith.subf %112, %113 : vector<8x1xf32>
    %115 = vector.broadcast %107 : vector<8x1xf32> to vector<8x64xf32>
    %116 = arith.subf %7, %115 : vector<8x64xf32>
    %cst_51 = arith.constant 9.99999974E-6 : f32
    %117 = vector.broadcast %cst_51 : f32 to vector<8x1xf32>
    %118 = arith.addf %114, %117 : vector<8x1xf32>
    %119 = math.rsqrt %118 : vector<8x1xf32>
    %120 = vector.broadcast %119 : vector<8x1xf32> to vector<8x64xf32>
    %121 = arith.mulf %116, %120 : vector<8x64xf32>
    %122 = vector.broadcast %101 : vector<1x64xf32> to vector<8x64xf32>
    %123 = arith.mulf %121, %122 : vector<8x64xf32>
    %124 = vector.broadcast %103 : vector<1x64xf32> to vector<8x64xf32>
    %125 = arith.addf %123, %124 : vector<8x64xf32>
    %c0_52 = arith.constant 0 : index
    %c0_53 = arith.constant 0 : index
    %c0_54 = arith.constant 0 : index
    %126 = vector.load %arg14[%c0_52, %c0_53, %c0_54] : memref<2x64x256xbf16, #tpu.memory_space<vmem>>, vector<1x64x256xbf16>
    %127 = vector.shape_cast %126 : vector<1x64x256xbf16> to vector<64x256xbf16>
    %128 = arith.truncf %125 : vector<8x64xf32> to vector<8x64xbf16>
    %cst_55 = arith.constant dense<0.000000e+00> : vector<8x256xf32>
    %129 = tpu.matmul %128, %127, %cst_55 {dimension_numbers = #tpu.dot_dimension_numbers<[1], [0], [0], [1], [0, 0, 1, 1], [], []>} : vector<8x64xbf16>, vector<64x256xbf16>, vector<8x256xf32> -> vector<8x256xf32>
    %c0_56 = arith.constant 0 : index
    %c0_57 = arith.constant 0 : index
    %c0_58 = arith.constant 0 : index
    %130 = vector.load %arg15[%c0_56, %c0_57, %c0_58] : memref<2x1x256xf32, #tpu.memory_space<vmem>>, vector<1x1x256xf32>
    %131 = vector.shape_cast %130 : vector<1x1x256xf32> to vector<1x256xf32>
    %132 = vector.broadcast %131 : vector<1x256xf32> to vector<8x256xf32>
    %133 = arith.addf %129, %132 : vector<8x256xf32>
    %cst_59 = arith.constant 5.000000e-01 : f32
    %134 = vector.broadcast %cst_59 : f32 to vector<8x256xf32>
    %135 = arith.mulf %134, %133 : vector<8x256xf32>
    %cst_60 = arith.constant 4.471500e-02 : f32
    %136 = vector.broadcast %cst_60 : f32 to vector<8x256xf32>
    %137 = arith.mulf %136, %133 : vector<8x256xf32>
    %138 = arith.mulf %137, %133 : vector<8x256xf32>
    %139 = arith.mulf %138, %133 : vector<8x256xf32>
    %140 = arith.addf %133, %139 : vector<8x256xf32>
    %cst_61 = arith.constant 0.797884583 : f32
    %141 = vector.broadcast %cst_61 : f32 to vector<8x256xf32>
    %142 = arith.mulf %141, %140 : vector<8x256xf32>
    %143 = math.tanh %142 : vector<8x256xf32>
    %cst_62 = arith.constant 1.000000e+00 : f32
    %144 = vector.broadcast %cst_62 : f32 to vector<8x256xf32>
    %145 = arith.addf %144, %143 : vector<8x256xf32>
    %146 = arith.mulf %135, %145 : vector<8x256xf32>
    %c0_63 = arith.constant 0 : index
    %c0_64 = arith.constant 0 : index
    %c0_65 = arith.constant 0 : index
    %147 = vector.load %arg16[%c0_63, %c0_64, %c0_65] : memref<2x256x64xbf16, #tpu.memory_space<vmem>>, vector<1x256x64xbf16>
    %148 = vector.shape_cast %147 : vector<1x256x64xbf16> to vector<256x64xbf16>
    %149 = arith.truncf %146 : vector<8x256xf32> to vector<8x256xbf16>
    %cst_66 = arith.constant dense<0.000000e+00> : vector<8x64xf32>
    %150 = tpu.matmul %149, %148, %cst_66 {dimension_numbers = #tpu.dot_dimension_numbers<[1], [0], [0], [1], [0, 0, 1, 1], [], []>} : vector<8x256xbf16>, vector<256x64xbf16>, vector<8x64xf32> -> vector<8x64xf32>
    %c0_67 = arith.constant 0 : index
    %c0_68 = arith.constant 0 : index
    %c0_69 = arith.constant 0 : index
    %151 = vector.load %arg17[%c0_67, %c0_68, %c0_69] : memref<2x1x64xf32, #tpu.memory_space<vmem>>, vector<1x1x64xf32>
    %152 = vector.shape_cast %151 : vector<1x1x64xf32> to vector<1x64xf32>
    %153 = vector.broadcast %152 : vector<1x64xf32> to vector<8x64xf32>
    %154 = arith.addf %150, %153 : vector<8x64xf32>
    %155 = arith.addf %154, %99 : vector<8x64xf32>
    %156 = arith.addf %155, %7 : vector<8x64xf32>
    %c1 = arith.constant 1 : index
    %c0_70 = arith.constant 0 : index
    %c0_71 = arith.constant 0 : index
    %157 = vector.load %arg6[%c1, %c0_70, %c0_71] : memref<2x1x64xf32, #tpu.memory_space<vmem>>, vector<1x1x64xf32>
    %158 = vector.shape_cast %157 : vector<1x1x64xf32> to vector<1x64xf32>
    %c1_72 = arith.constant 1 : index
    %c0_73 = arith.constant 0 : index
    %c0_74 = arith.constant 0 : index
    %159 = vector.load %arg7[%c1_72, %c0_73, %c0_74] : memref<2x1x64xf32, #tpu.memory_space<vmem>>, vector<1x1x64xf32>
    %160 = vector.shape_cast %159 : vector<1x1x64xf32> to vector<1x64xf32>
    %cst_75 = arith.constant dense<0.000000e+00> : vector<8xf32>
    %161 = vector.multi_reduction <add>, %156, %cst_75 [1] : vector<8x64xf32> to vector<8xf32>
    %162 = vector.shape_cast %161 : vector<8xf32> to vector<8x1xf32>
    %cst_76 = arith.constant 6.400000e+01 : f32
    %163 = vector.broadcast %cst_76 : f32 to vector<8x1xf32>
    %164 = arith.divf %162, %163 : vector<8x1xf32>
    %165 = arith.mulf %156, %156 : vector<8x64xf32>
    %cst_77 = arith.constant dense<0.000000e+00> : vector<8xf32>
    %166 = vector.multi_reduction <add>, %165, %cst_77 [1] : vector<8x64xf32> to vector<8xf32>
    %167 = vector.shape_cast %166 : vector<8xf32> to vector<8x1xf32>
    %cst_78 = arith.constant 6.400000e+01 : f32
    %168 = vector.broadcast %cst_78 : f32 to vector<8x1xf32>
    %169 = arith.divf %167, %168 : vector<8x1xf32>
    %170 = arith.mulf %164, %164 : vector<8x1xf32>
    %171 = arith.subf %169, %170 : vector<8x1xf32>
    %172 = vector.broadcast %164 : vector<8x1xf32> to vector<8x64xf32>
    %173 = arith.subf %156, %172 : vector<8x64xf32>
    %cst_79 = arith.constant 9.99999974E-6 : f32
    %174 = vector.broadcast %cst_79 : f32 to vector<8x1xf32>
    %175 = arith.addf %171, %174 : vector<8x1xf32>
    %176 = math.rsqrt %175 : vector<8x1xf32>
    %177 = vector.broadcast %176 : vector<8x1xf32> to vector<8x64xf32>
    %178 = arith.mulf %173, %177 : vector<8x64xf32>
    %179 = vector.broadcast %158 : vector<1x64xf32> to vector<8x64xf32>
    %180 = arith.mulf %178, %179 : vector<8x64xf32>
    %181 = vector.broadcast %160 : vector<1x64xf32> to vector<8x64xf32>
    %182 = arith.addf %180, %181 : vector<8x64xf32>
    %c1_80 = arith.constant 1 : index
    %c0_81 = arith.constant 0 : index
    %c0_82 = arith.constant 0 : index
    %183 = vector.load %arg10[%c1_80, %c0_81, %c0_82] : memref<2x64x192xbf16, #tpu.memory_space<vmem>>, vector<1x64x192xbf16>
    %184 = vector.shape_cast %183 : vector<1x64x192xbf16> to vector<64x192xbf16>
    %185 = arith.truncf %182 : vector<8x64xf32> to vector<8x64xbf16>
    %cst_83 = arith.constant dense<0.000000e+00> : vector<8x192xf32>
    %186 = tpu.matmul %185, %184, %cst_83 {dimension_numbers = #tpu.dot_dimension_numbers<[1], [0], [0], [1], [0, 0, 1, 1], [], []>} : vector<8x64xbf16>, vector<64x192xbf16>, vector<8x192xf32> -> vector<8x192xf32>
    %c1_84 = arith.constant 1 : index
    %c0_85 = arith.constant 0 : index
    %c0_86 = arith.constant 0 : index
    %187 = vector.load %arg11[%c1_84, %c0_85, %c0_86] : memref<2x1x192xf32, #tpu.memory_space<vmem>>, vector<1x1x192xf32>
    %188 = vector.shape_cast %187 : vector<1x1x192xf32> to vector<1x192xf32>
    %189 = vector.broadcast %188 : vector<1x192xf32> to vector<8x192xf32>
    %190 = arith.addf %186, %189 : vector<8x192xf32>
    %191 = vector.extract_strided_slice %190 {offsets = [0, 0], sizes = [8, 128], strides = [1, 1]} : vector<8x192xf32> to vector<8x128xf32>
    %192 = vector.extract_strided_slice %190 {offsets = [0, 128], sizes = [8, 64], strides = [1, 1]} : vector<8x192xf32> to vector<8x64xf32>
    %193 = arith.truncf %191 : vector<8x128xf32> to vector<8x128xbf16>
    %cst_87 = arith.constant dense<0.000000e+00> : vector<8x128xf32>
    %194 = tpu.matmul %193, %11, %cst_87 {dimension_numbers = #tpu.dot_dimension_numbers<[1], [0], [0], [1], [0, 0, 1, 1], [], []>} : vector<8x128xbf16>, vector<128x128xbf16>, vector<8x128xf32> -> vector<8x128xf32>
    %195 = arith.mulf %191, %8 : vector<8x128xf32>
    %196 = arith.mulf %194, %9 : vector<8x128xf32>
    %197 = arith.addf %195, %196 : vector<8x128xf32>
    %198 = vector.extract_strided_slice %197 {offsets = [0, 0], sizes = [8, 64], strides = [1, 1]} : vector<8x128xf32> to vector<8x64xf32>
    %199 = vector.extract_strided_slice %197 {offsets = [0, 64], sizes = [8, 64], strides = [1, 1]} : vector<8x128xf32> to vector<8x64xf32>
    %200 = vector.extract_strided_slice %198 {offsets = [0, 0], sizes = [8, 16], strides = [1, 1]} : vector<8x64xf32> to vector<8x16xf32>
    %201 = vector.extract_strided_slice %198 {offsets = [0, 16], sizes = [8, 16], strides = [1, 1]} : vector<8x64xf32> to vector<8x16xf32>
    %202 = vector.extract_strided_slice %198 {offsets = [0, 32], sizes = [8, 16], strides = [1, 1]} : vector<8x64xf32> to vector<8x16xf32>
    %203 = vector.extract_strided_slice %198 {offsets = [0, 48], sizes = [8, 16], strides = [1, 1]} : vector<8x64xf32> to vector<8x16xf32>
    %204 = tpu.concatenate %200, %201, %202, %203 in 0 : vector<8x16xf32>, vector<8x16xf32>, vector<8x16xf32>, vector<8x16xf32> -> vector<32x16xf32>
    %205 = vector.extract_strided_slice %199 {offsets = [0, 0], sizes = [8, 16], strides = [1, 1]} : vector<8x64xf32> to vector<8x16xf32>
    %206 = vector.extract_strided_slice %199 {offsets = [0, 16], sizes = [8, 16], strides = [1, 1]} : vector<8x64xf32> to vector<8x16xf32>
    %207 = vector.extract_strided_slice %199 {offsets = [0, 32], sizes = [8, 16], strides = [1, 1]} : vector<8x64xf32> to vector<8x16xf32>
    %208 = vector.extract_strided_slice %199 {offsets = [0, 48], sizes = [8, 16], strides = [1, 1]} : vector<8x64xf32> to vector<8x16xf32>
    %209 = tpu.concatenate %205, %206, %207, %208 in 0 : vector<8x16xf32>, vector<8x16xf32>, vector<8x16xf32>, vector<8x16xf32> -> vector<32x16xf32>
    %210 = vector.extract_strided_slice %192 {offsets = [0, 0], sizes = [8, 16], strides = [1, 1]} : vector<8x64xf32> to vector<8x16xf32>
    %211 = vector.extract_strided_slice %192 {offsets = [0, 16], sizes = [8, 16], strides = [1, 1]} : vector<8x64xf32> to vector<8x16xf32>
    %212 = vector.extract_strided_slice %192 {offsets = [0, 32], sizes = [8, 16], strides = [1, 1]} : vector<8x64xf32> to vector<8x16xf32>
    %213 = vector.extract_strided_slice %192 {offsets = [0, 48], sizes = [8, 16], strides = [1, 1]} : vector<8x64xf32> to vector<8x16xf32>
    %214 = tpu.concatenate %210, %211, %212, %213 in 0 : vector<8x16xf32>, vector<8x16xf32>, vector<8x16xf32>, vector<8x16xf32> -> vector<32x16xf32>
    %215 = arith.truncf %204 : vector<32x16xf32> to vector<32x16xbf16>
    %216 = arith.truncf %209 : vector<32x16xf32> to vector<32x16xbf16>
    %cst_88 = arith.constant dense<0.000000e+00> : vector<32x32xf32>
    %217 = tpu.matmul %215, %216, %cst_88 {dimension_numbers = #tpu.dot_dimension_numbers<[1], [1], [0], [0], [0, 0, 1, 0], [], []>} : vector<32x16xbf16>, vector<32x16xbf16>, vector<32x32xf32> -> vector<32x32xf32>
    %218 = arith.addf %217, %10 : vector<32x32xf32>
    %cst_89 = arith.constant dense<0xFF800000> : vector<32xf32>
    %219 = vector.multi_reduction <maximumf>, %218, %cst_89 [1] : vector<32x32xf32> to vector<32xf32>
    %220 = vector.shape_cast %219 : vector<32xf32> to vector<32x1xf32>
    %221 = vector.broadcast %220 : vector<32x1xf32> to vector<32x32xf32>
    %222 = arith.subf %218, %221 : vector<32x32xf32>
    %223 = math.exp %222 : vector<32x32xf32>
    %cst_90 = arith.constant dense<0.000000e+00> : vector<32xf32>
    %224 = vector.multi_reduction <add>, %223, %cst_90 [1] : vector<32x32xf32> to vector<32xf32>
    %225 = vector.shape_cast %224 : vector<32xf32> to vector<32x1xf32>
    %226 = tpu.reciprocal %225 {approx = true} : vector<32x1xf32> -> vector<32x1xf32>
    %227 = vector.broadcast %226 : vector<32x1xf32> to vector<32x32xf32>
    %228 = arith.mulf %223, %227 : vector<32x32xf32>
    %229 = arith.truncf %228 : vector<32x32xf32> to vector<32x32xbf16>
    %230 = arith.truncf %214 : vector<32x16xf32> to vector<32x16xbf16>
    %cst_91 = arith.constant dense<0.000000e+00> : vector<32x16xf32>
    %231 = tpu.matmul %229, %230, %cst_91 {dimension_numbers = #tpu.dot_dimension_numbers<[1], [0], [0], [1], [0, 0, 1, 1], [], []>} : vector<32x32xbf16>, vector<32x16xbf16>, vector<32x16xf32> -> vector<32x16xf32>
    %232 = vector.extract_strided_slice %231 {offsets = [0, 0], sizes = [8, 16], strides = [1, 1]} : vector<32x16xf32> to vector<8x16xf32>
    %233 = vector.extract_strided_slice %231 {offsets = [8, 0], sizes = [8, 16], strides = [1, 1]} : vector<32x16xf32> to vector<8x16xf32>
    %234 = vector.extract_strided_slice %231 {offsets = [16, 0], sizes = [8, 16], strides = [1, 1]} : vector<32x16xf32> to vector<8x16xf32>
    %235 = vector.extract_strided_slice %231 {offsets = [24, 0], sizes = [8, 16], strides = [1, 1]} : vector<32x16xf32> to vector<8x16xf32>
    %236 = tpu.concatenate %232, %233, %234, %235 in 1 : vector<8x16xf32>, vector<8x16xf32>, vector<8x16xf32>, vector<8x16xf32> -> vector<8x64xf32>
    %c1_92 = arith.constant 1 : index
    %c0_93 = arith.constant 0 : index
    %c0_94 = arith.constant 0 : index
    %237 = vector.load %arg12[%c1_92, %c0_93, %c0_94] : memref<2x64x64xbf16, #tpu.memory_space<vmem>>, vector<1x64x64xbf16>
    %238 = vector.shape_cast %237 : vector<1x64x64xbf16> to vector<64x64xbf16>
    %239 = arith.truncf %236 : vector<8x64xf32> to vector<8x64xbf16>
    %cst_95 = arith.constant dense<0.000000e+00> : vector<8x64xf32>
    %240 = tpu.matmul %239, %238, %cst_95 {dimension_numbers = #tpu.dot_dimension_numbers<[1], [0], [0], [1], [0, 0, 1, 1], [], []>} : vector<8x64xbf16>, vector<64x64xbf16>, vector<8x64xf32> -> vector<8x64xf32>
    %c1_96 = arith.constant 1 : index
    %c0_97 = arith.constant 0 : index
    %c0_98 = arith.constant 0 : index
    %241 = vector.load %arg13[%c1_96, %c0_97, %c0_98] : memref<2x1x64xf32, #tpu.memory_space<vmem>>, vector<1x1x64xf32>
    %242 = vector.shape_cast %241 : vector<1x1x64xf32> to vector<1x64xf32>
    %243 = vector.broadcast %242 : vector<1x64xf32> to vector<8x64xf32>
    %244 = arith.addf %240, %243 : vector<8x64xf32>
    %c1_99 = arith.constant 1 : index
    %c0_100 = arith.constant 0 : index
    %c0_101 = arith.constant 0 : index
    %245 = vector.load %arg8[%c1_99, %c0_100, %c0_101] : memref<2x1x64xf32, #tpu.memory_space<vmem>>, vector<1x1x64xf32>
    %246 = vector.shape_cast %245 : vector<1x1x64xf32> to vector<1x64xf32>
    %c1_102 = arith.constant 1 : index
    %c0_103 = arith.constant 0 : index
    %c0_104 = arith.constant 0 : index
    %247 = vector.load %arg9[%c1_102, %c0_103, %c0_104] : memref<2x1x64xf32, #tpu.memory_space<vmem>>, vector<1x1x64xf32>
    %248 = vector.shape_cast %247 : vector<1x1x64xf32> to vector<1x64xf32>
    %cst_105 = arith.constant dense<0.000000e+00> : vector<8xf32>
    %249 = vector.multi_reduction <add>, %156, %cst_105 [1] : vector<8x64xf32> to vector<8xf32>
    %250 = vector.shape_cast %249 : vector<8xf32> to vector<8x1xf32>
    %cst_106 = arith.constant 6.400000e+01 : f32
    %251 = vector.broadcast %cst_106 : f32 to vector<8x1xf32>
    %252 = arith.divf %250, %251 : vector<8x1xf32>
    %253 = arith.mulf %156, %156 : vector<8x64xf32>
    %cst_107 = arith.constant dense<0.000000e+00> : vector<8xf32>
    %254 = vector.multi_reduction <add>, %253, %cst_107 [1] : vector<8x64xf32> to vector<8xf32>
    %255 = vector.shape_cast %254 : vector<8xf32> to vector<8x1xf32>
    %cst_108 = arith.constant 6.400000e+01 : f32
    %256 = vector.broadcast %cst_108 : f32 to vector<8x1xf32>
    %257 = arith.divf %255, %256 : vector<8x1xf32>
    %258 = arith.mulf %252, %252 : vector<8x1xf32>
    %259 = arith.subf %257, %258 : vector<8x1xf32>
    %260 = vector.broadcast %252 : vector<8x1xf32> to vector<8x64xf32>
    %261 = arith.subf %156, %260 : vector<8x64xf32>
    %cst_109 = arith.constant 9.99999974E-6 : f32
    %262 = vector.broadcast %cst_109 : f32 to vector<8x1xf32>
    %263 = arith.addf %259, %262 : vector<8x1xf32>
    %264 = math.rsqrt %263 : vector<8x1xf32>
    %265 = vector.broadcast %264 : vector<8x1xf32> to vector<8x64xf32>
    %266 = arith.mulf %261, %265 : vector<8x64xf32>
    %267 = vector.broadcast %246 : vector<1x64xf32> to vector<8x64xf32>
    %268 = arith.mulf %266, %267 : vector<8x64xf32>
    %269 = vector.broadcast %248 : vector<1x64xf32> to vector<8x64xf32>
    %270 = arith.addf %268, %269 : vector<8x64xf32>
    %c1_110 = arith.constant 1 : index
    %c0_111 = arith.constant 0 : index
    %c0_112 = arith.constant 0 : index
    %271 = vector.load %arg14[%c1_110, %c0_111, %c0_112] : memref<2x64x256xbf16, #tpu.memory_space<vmem>>, vector<1x64x256xbf16>
    %272 = vector.shape_cast %271 : vector<1x64x256xbf16> to vector<64x256xbf16>
    %273 = arith.truncf %270 : vector<8x64xf32> to vector<8x64xbf16>
    %cst_113 = arith.constant dense<0.000000e+00> : vector<8x256xf32>
    %274 = tpu.matmul %273, %272, %cst_113 {dimension_numbers = #tpu.dot_dimension_numbers<[1], [0], [0], [1], [0, 0, 1, 1], [], []>} : vector<8x64xbf16>, vector<64x256xbf16>, vector<8x256xf32> -> vector<8x256xf32>
    %c1_114 = arith.constant 1 : index
    %c0_115 = arith.constant 0 : index
    %c0_116 = arith.constant 0 : index
    %275 = vector.load %arg15[%c1_114, %c0_115, %c0_116] : memref<2x1x256xf32, #tpu.memory_space<vmem>>, vector<1x1x256xf32>
    %276 = vector.shape_cast %275 : vector<1x1x256xf32> to vector<1x256xf32>
    %277 = vector.broadcast %276 : vector<1x256xf32> to vector<8x256xf32>
    %278 = arith.addf %274, %277 : vector<8x256xf32>
    %cst_117 = arith.constant 5.000000e-01 : f32
    %279 = vector.broadcast %cst_117 : f32 to vector<8x256xf32>
    %280 = arith.mulf %279, %278 : vector<8x256xf32>
    %cst_118 = arith.constant 4.471500e-02 : f32
    %281 = vector.broadcast %cst_118 : f32 to vector<8x256xf32>
    %282 = arith.mulf %281, %278 : vector<8x256xf32>
    %283 = arith.mulf %282, %278 : vector<8x256xf32>
    %284 = arith.mulf %283, %278 : vector<8x256xf32>
    %285 = arith.addf %278, %284 : vector<8x256xf32>
    %cst_119 = arith.constant 0.797884583 : f32
    %286 = vector.broadcast %cst_119 : f32 to vector<8x256xf32>
    %287 = arith.mulf %286, %285 : vector<8x256xf32>
    %288 = math.tanh %287 : vector<8x256xf32>
    %cst_120 = arith.constant 1.000000e+00 : f32
    %289 = vector.broadcast %cst_120 : f32 to vector<8x256xf32>
    %290 = arith.addf %289, %288 : vector<8x256xf32>
    %291 = arith.mulf %280, %290 : vector<8x256xf32>
    %c1_121 = arith.constant 1 : index
    %c0_122 = arith.constant 0 : index
    %c0_123 = arith.constant 0 : index
    %292 = vector.load %arg16[%c1_121, %c0_122, %c0_123] : memref<2x256x64xbf16, #tpu.memory_space<vmem>>, vector<1x256x64xbf16>
    %293 = vector.shape_cast %292 : vector<1x256x64xbf16> to vector<256x64xbf16>
    %294 = arith.truncf %291 : vector<8x256xf32> to vector<8x256xbf16>
    %cst_124 = arith.constant dense<0.000000e+00> : vector<8x64xf32>
    %295 = tpu.matmul %294, %293, %cst_124 {dimension_numbers = #tpu.dot_dimension_numbers<[1], [0], [0], [1], [0, 0, 1, 1], [], []>} : vector<8x256xbf16>, vector<256x64xbf16>, vector<8x64xf32> -> vector<8x64xf32>
    %c1_125 = arith.constant 1 : index
    %c0_126 = arith.constant 0 : index
    %c0_127 = arith.constant 0 : index
    %296 = vector.load %arg17[%c1_125, %c0_126, %c0_127] : memref<2x1x64xf32, #tpu.memory_space<vmem>>, vector<1x1x64xf32>
    %297 = vector.shape_cast %296 : vector<1x1x64xf32> to vector<1x64xf32>
    %298 = vector.broadcast %297 : vector<1x64xf32> to vector<8x64xf32>
    %299 = arith.addf %295, %298 : vector<8x64xf32>
    %300 = arith.addf %299, %244 : vector<8x64xf32>
    %301 = arith.addf %300, %156 : vector<8x64xf32>
    %c0_128 = arith.constant 0 : index
    %c0_129 = arith.constant 0 : index
    %302 = vector.load %arg18[%c0_128, %c0_129] : memref<1x64xf32, #tpu.memory_space<vmem>>, vector<1x64xf32>
    %c0_130 = arith.constant 0 : index
    %c0_131 = arith.constant 0 : index
    %303 = vector.load %arg19[%c0_130, %c0_131] : memref<1x64xf32, #tpu.memory_space<vmem>>, vector<1x64xf32>
    %cst_132 = arith.constant dense<0.000000e+00> : vector<8xf32>
    %304 = vector.multi_reduction <add>, %301, %cst_132 [1] : vector<8x64xf32> to vector<8xf32>
    %305 = vector.shape_cast %304 : vector<8xf32> to vector<8x1xf32>
    %cst_133 = arith.constant 6.400000e+01 : f32
    %306 = vector.broadcast %cst_133 : f32 to vector<8x1xf32>
    %307 = arith.divf %305, %306 : vector<8x1xf32>
    %308 = arith.mulf %301, %301 : vector<8x64xf32>
    %cst_134 = arith.constant dense<0.000000e+00> : vector<8xf32>
    %309 = vector.multi_reduction <add>, %308, %cst_134 [1] : vector<8x64xf32> to vector<8xf32>
    %310 = vector.shape_cast %309 : vector<8xf32> to vector<8x1xf32>
    %cst_135 = arith.constant 6.400000e+01 : f32
    %311 = vector.broadcast %cst_135 : f32 to vector<8x1xf32>
    %312 = arith.divf %310, %311 : vector<8x1xf32>
    %313 = arith.mulf %307, %307 : vector<8x1xf32>
    %314 = arith.subf %312, %313 : vector<8x1xf32>
    %315 = vector.broadcast %307 : vector<8x1xf32> to vector<8x64xf32>
    %316 = arith.subf %301, %315 : vector<8x64xf32>
    %cst_136 = arith.constant 9.99999974E-6 : f32
    %317 = vector.broadcast %cst_136 : f32 to vector<8x1xf32>
    %318 = arith.addf %314, %317 : vector<8x1xf32>
    %319 = math.rsqrt %318 : vector<8x1xf32>
    %320 = vector.broadcast %319 : vector<8x1xf32> to vector<8x64xf32>
    %321 = arith.mulf %316, %320 : vector<8x64xf32>
    %322 = vector.broadcast %302 : vector<1x64xf32> to vector<8x64xf32>
    %323 = arith.mulf %321, %322 : vector<8x64xf32>
    %324 = vector.broadcast %303 : vector<1x64xf32> to vector<8x64xf32>
    %325 = arith.addf %323, %324 : vector<8x64xf32>
    %c0_137 = arith.constant 0 : index
    %c0_138 = arith.constant 0 : index
    %326 = vector.load %arg21[%c0_137, %c0_138] : memref<8x64xf32, #tpu.memory_space<vmem>>, vector<8x64xf32>
    tpu.vector_store %arg21[%c0_137, %c0_138], %325 {strides = array<i32>} : memref<8x64xf32, #tpu.memory_space<vmem>>, vector<8x64xf32>,
    %c0_139 = arith.constant 0 : index
    %c0_140 = arith.constant 0 : index
    %327 = vector.load %arg20[%c0_139, %c0_140] : memref<64x256xbf16, #tpu.memory_space<vmem>>, vector<64x256xbf16>
    %328 = arith.truncf %325 : vector<8x64xf32> to vector<8x64xbf16>
    %cst_141 = arith.constant dense<0.000000e+00> : vector<8x256xf32>
    %329 = tpu.matmul %328, %327, %cst_141 {dimension_numbers = #tpu.dot_dimension_numbers<[1], [0], [0], [1], [0, 0, 1, 1], [], []>} : vector<8x64xbf16>, vector<64x256xbf16>, vector<8x256xf32> -> vector<8x256xf32>
    %c0_142 = arith.constant 0 : index
    %c0_143 = arith.constant 0 : index
    %330 = vector.load %arg22[%c0_142, %c0_143] : memref<8x256xf32, #tpu.memory_space<vmem>>, vector<8x256xf32>
    tpu.vector_store %arg22[%c0_142, %c0_143], %329 {strides = array<i32>} : memref<8x256xf32, #tpu.memory_space<vmem>>, vector<8x256xf32>,
    return
  }
}

</mosaic_0001>

<bundles_post_ra>
// kernel: tile.14
= control target key start
LH: loop header
LB: loop body
LE: loop exit
PB: predicated region body
PF: predicated region fallthrough
CT: control target
= control target key end

     0   :  { %vm4_vm0 = vcmask 1047556   ;;  %s99_s14 = smov 112   ;;  %s100_s19 = smov 80   ;;  %vm6_vm1 = vcmask 130048   ;;  %vm16_vm2 = vcmask 1048448   ;;  %vm26_vm3 = vcmask 917248   ;;  %s196_s0 = inlined_call_operand.vmem [shape: f32[8,8,16], index: 0, kind: input, shape index: {}]   ;;  %s197_s1 = inlined_call_operand.vmem [shape: f32[8,128], index: 1, kind: output, shape index: {}]  }
   0x1   :  { %v78_v0 = vld [vmem:[%s196_s0 + $0x7] ss:$8 sm:$0xf]   ;;  %v82_v3 = vld [vmem:[%s196_s0 + $0x5] ss:$8 sm:$0xf]  }
   0x2   :  { %v79_v1 = vld [vmem:[%s196_s0 + $0x7] ss:$8 sm:$0xf0]   ;;  %v83_v4 = vld [vmem:[%s196_s0 + $0x5] ss:$8 sm:$0xf0]  }
   0x3   :  { %v13_v2 = vsel %vm4_vm0, %v79_v1, %v78_v0  ;;  %v33_v5 = vsel %vm4_vm0, %v83_v4, %v82_v3  ;;  %v80_v6 = vld [vmem:[%s196_s0 + $0x6] ss:$8 sm:$0xf]   ;;  %v84_v9 = vld [vmem:[%s196_s0 + $0x4] ss:$8 sm:$0xf]  }
   0x4   :  { %14 = vrot.lane.b32.xlu0 %v13_v2, %s99_s14  ;;  %v81_v7 = vld [vmem:[%s196_s0 + $0x6] ss:$8 sm:$0xf0]   ;;  %34 = vrot.lane.b32.xlu1 %v33_v5, %s100_s19  ;;  %v85_v10 = vld [vmem:[%s196_s0 + $0x4] ss:$8 sm:$0xf0]  }
   0x5   :  { %v23_v8 = vsel %vm4_vm0, %v81_v7, %v80_v6  ;;  %v86_v11 = vld [vmem:[%s196_s0 + $0x3] ss:$8 sm:$0xf]   ;;  %v43_v12 = vsel %vm4_vm0, %v85_v10, %v84_v9  ;;  %s101_s28 = smov 96   ;;  %s102_s4 = smov 64   ;;  %vm36_vm4 = vcmask 786048  }
   0x6   :  { %v87_v13 = vld [vmem:[%s196_s0 + $0x3] ss:$8 sm:$0xf0]   ;;  %v88_v14 = vld [vmem:[%s196_s0 + $0x2] ss:$8 sm:$0xf]  }
   0x7   :  { %v89_v15 = vld [vmem:[%s196_s0 + $0x2] ss:$8 sm:$0xf0]   ;;  %v53_v16 = vsel %vm4_vm0, %v87_v13, %v86_v11  ;;  %v90_v17 = vld [vmem:[%s196_s0 + $0x1] ss:$8 sm:$0xf]  }
   0x8   :  { %24 = vrot.lane.b32.xlu0 %v23_v8, %s101_s28  ;;  %44 = vrot.lane.b32.xlu1 %v43_v12, %s102_s4  ;;  %v63_v18 = vsel %vm4_vm0, %v89_v15, %v88_v14  ;;  %v91_v19 = vld [vmem:[%s196_s0 + $0x1] ss:$8 sm:$0xf0]   ;;  %v2_v20 = vld [vmem:[%s196_s0] ss:$8 sm:$0xf]  }
   0x9   :  { %v3_v21 = vld [vmem:[%s196_s0] ss:$8 sm:$0xf0]   ;;  %s103_s0 = smov 48   ;;  %s104_s13 = smov 32   ;;  %v73_v23 = vsel %vm4_vm0, %v91_v19, %v90_v17  ;;  %vm46_vm5 = vcmask 654848  }
   0xa   :  { %v5_v22 = vsel %vm4_vm0, %v3_v21, %v2_v20  ;;  %s105_s16 = smov 16   ;;  %vm56_vm6 = vcmask 523648   ;;  %vm66_vm7 = vcmask 392448   ;;  %vm76_vm8 = vcmask 261248  }
   0xb   :  { %7 = vst.msk [vmem:[%s197_s1] sm:$0xff] %vm6_vm1, %v5_v22  }
   0xc   :  { %54 = vrot.lane.b32.xlu0 %v53_v16, %s103_s0  ;;  %64 = vrot.lane.b32.xlu1 %v63_v18, %s104_s13 }
  0x10   :  { %74 = vrot.lane.b32.xlu0 %v73_v23, %s105_s16 }
  0x76   :  { %v15_v24 = vpop.permute.xlu0 %14   ;;  %v35_v25 = vpop.permute.xlu1 %34  }
  0x77   :  { %17 = vst.msk [vmem:[%s197_s1] sm:$0xff] %vm16_vm2, %v15_v24  }
  0x7a   :  { %v25_v26 = vpop.permute.xlu0 %24   ;;  %v45_v27 = vpop.permute.xlu1 %44  }
  0x7b   :  { %27 = vst.msk [vmem:[%s197_s1] sm:$0xff] %vm26_vm3, %v25_v26  }
  0x7c   :  { %37 = vst.msk [vmem:[%s197_s1] sm:$0xff] %vm36_vm4, %v35_v25  }
  0x7d   :  { %47 = vst.msk [vmem:[%s197_s1] sm:$0xff] %vm46_vm5, %v45_v27  }
  0x7e   :  { %v55_v28 = vpop.permute.xlu0 %54   ;;  %v65_v29 = vpop.permute.xlu1 %64  }
  0x7f   :  { %57 = vst.msk [vmem:[%s197_s1] sm:$0xff] %vm56_vm6, %v55_v28  }
  0x80   :  { %67 = vst.msk [vmem:[%s197_s1] sm:$0xff] %vm66_vm7, %v65_v29  }
  0x82   :  { %v75_v30 = vpop.permute.xlu0 %74  }
  0x83   :  { %77 = vst.msk [vmem:[%s197_s1] sm:$0xff] %vm76_vm8, %v75_v30  }

// kernel: gpt_neox_forward.1
= control target key start
LH: loop header
LB: loop body
LE: loop exit
PB: predicated region body
PF: predicated region fallthrough
CT: control target
= control target key end

     0   :  { %s3416_s0 = inlined_call_operand.vmem [shape: s32[8,1], index: 0, kind: input, shape index: {}]   ;;  %s3417_s1 = inlined_call_operand.vmem [shape: f32[8,128], index: 1, kind: input, shape index: {}]   ;;  %s3418_s2 = inlined_call_operand.vmem [shape: f32[8,128], index: 2, kind: input, shape index: {}]   ;;  %s3419_s3 = inlined_call_operand.vmem [shape: f32[32,32], index: 3, kind: input, shape index: {}]   ;;  %s3420_s4 = inlined_call_operand.vmem [shape: f32[256,64], index: 4, kind: input, shape index: {}]   ;;  %s3421_s5 = inlined_call_operand.vmem [shape: bf16[128,128], index: 5, kind: input, shape index: {}]   ;;  %s3422_s6 = inlined_call_operand.vmem [shape: f32[2,1,64], index: 6, kind: input, shape index: {}]   ;;  %s3423_s7 = inlined_call_operand.vmem [shape: f32[2,1,64], index: 7, kind: input, shape index: {}]   ;;  %s3424_s8 = inlined_call_operand.vmem [shape: f32[2,1,64], index: 8, kind: input, shape index: {}]   ;;  %s3425_s9 = inlined_call_operand.vmem [shape: f32[2,1,64], index: 9, kind: input, shape index: {}]   ;;  %s3426_s10 = inlined_call_operand.vmem [shape: bf16[2,64,192], index: 10, kind: input, shape index: {}]   ;;  %s3427_s11 = inlined_call_operand.vmem [shape: f32[2,1,192], index: 11, kind: input, shape index: {}]   ;;  %s3428_s12 = inlined_call_operand.vmem [shape: bf16[2,64,64], index: 12, kind: input, shape index: {}]   ;;  %s3429_s13 = inlined_call_operand.vmem [shape: f32[2,1,64], index: 13, kind: input, shape index: {}]   ;;  %s3430_s14 = inlined_call_operand.vmem [shape: bf16[2,64,256], index: 14, kind: input, shape index: {}]   ;;  %s3431_s15 = inlined_call_operand.vmem [shape: f32[2,1,256], index: 15, kind: input, shape index: {}]   ;;  %s3432_s16 = inlined_call_operand.vmem [shape: bf16[2,256,64], index: 16, kind: input, shape index: {}]   ;;  %s3433_s17 = inlined_call_operand.vmem [shape: f32[2,1,64], index: 17, kind: input, shape index: {}]   ;;  %s3434_s18 = inlined_call_operand.vmem [shape: f32[1,64], index: 18, kind: input, shape index: {}]   ;;  %s3435_s19 = inlined_call_operand.vmem [shape: f32[1,64], index: 19, kind: input, shape index: {}]   ;;  %s3436_s20 = inlined_call_operand.vmem [shape: bf16[64,256], index: 20, kind: input, shape index: {}]   ;;  %s3437_s21 = inlined_call_operand.hbm [shape: f32[8,64], index: 21, kind: output, shape index: {0}]   ;;  %s3438_s22 = inlined_call_operand.hbm [shape: f32[8,256], index: 22, kind: output, shape index: {1}]  }
   0x1   :  { %3446 = sst [smem:[#allocation8_spill]] %s3416_s0 }
   0x2   :  { %3447 = sst [smem:[#allocation9_spill]] %s3417_s1 }
   0x3   :  { %3448 = sst [smem:[#allocation10_spill]] %s3418_s2 }
   0x4   :  { %3449 = sst [smem:[#allocation11_spill]] %s3419_s3 }
   0x5   :  { %3450 = sst [smem:[#allocation12_spill]] %s3420_s4 }
   0x6   :  { %3451 = sst [smem:[#allocation13_spill]] %s3421_s5 }
   0x7   :  { %3452 = sst [smem:[#allocation14_spill]] %s3422_s6 }
   0x8   :  { %28 = vsyncpa [#allocation3], 0  ;;  %s3453_s29 = sld [smem:[#allocation8_spill]]  ;;  %v2626_v3 = vmov 0  }
   0x9   :  { %s3454_s0 = sld [smem:[#allocation12_spill]]  ;;  %2427 = vset.pattern.permute.xlu0 %v2626_v3  ;;  %339 = vmatprep.mubr.bf16.mxu1 %v2626_v3 }
   0xe   :  { %v73_v0 = vld [vmem:[%s3453_s29] sm:$0xff] }
   0xf   :  { %v117_v1 = vld [vmem:[%s3454_s0 + $0xf8] sm:$0xff]  ;;  %v116_v4 = vld [vmem:[%s3454_s0 + $0xf0] sm:$0xff]  ;;  %78 = vperm.xlu0 %2427, %v73_v0   ;;  %v115_v6 = vld [vmem:[%s3454_s0 + $0xe8] sm:$0xff] }
  0x10   :  { %v101_v2 = vld [vmem:[%s3454_s0 + $0x78] sm:$0xff]  ;;  %2191 = vmatprep.subr.mxu0 %v117_v1  ;;  %v100_v5 = vld [vmem:[%s3454_s0 + $0x70] sm:$0xff]  ;;  %v99_v7 = vld [vmem:[%s3454_s0 + $0x68] sm:$0xff] }
  0x11   :  { %2192 = vmatpush3.msra.mxu0 %v101_v2  ;;  %v114_v8 = vld [vmem:[%s3454_s0 + $0xe0] sm:$0xff]  ;;  %v113_v10 = vld [vmem:[%s3454_s0 + $0xd8] sm:$0xff]  ;;  %v112_v12 = vld [vmem:[%s3454_s0 + $0xd0] sm:$0xff] }
  0x12   :  { %2193 = vmatprep.subr.mxu0 %v116_v4  ;;  %v98_v9 = vld [vmem:[%s3454_s0 + $0x60] sm:$0xff]  ;;  %v97_v11 = vld [vmem:[%s3454_s0 + $0x58] sm:$0xff]  ;;  %v96_v13 = vld [vmem:[%s3454_s0 + $0x50] sm:$0xff] }
  0x13   :  { %2194 = vmatpush3.msra.mxu0 %v100_v5  ;;  %v111_v14 = vld [vmem:[%s3454_s0 + $0xc8] sm:$0xff]  ;;  %v110_v16 = vld [vmem:[%s3454_s0 + $0xc0] sm:$0xff]  ;;  %v109_v18 = vld [vmem:[%s3454_s0 + $0xb8] sm:$0xff] }
  0x14   :  { %2195 = vmatprep.subr.mxu0 %v115_v6  ;;  %v95_v15 = vld [vmem:[%s3454_s0 + $0x48] sm:$0xff]  ;;  %v94_v17 = vld [vmem:[%s3454_s0 + $0x40] sm:$0xff]  ;;  %v93_v19 = vld [vmem:[%s3454_s0 + $0x38] sm:$0xff] }
  0x15   :  { %2196 = vmatpush3.msra.mxu0 %v99_v7  ;;  %v108_v20 = vld [vmem:[%s3454_s0 + $0xb0] sm:$0xff]  ;;  %v107_v22 = vld [vmem:[%s3454_s0 + $0xa8] sm:$0xff]  ;;  %v106_v24 = vld [vmem:[%s3454_s0 + $0xa0] sm:$0xff] }
  0x16   :  { %2197 = vmatprep.subr.mxu0 %v114_v8  ;;  %v92_v21 = vld [vmem:[%s3454_s0 + $0x30] sm:$0xff]  ;;  %v91_v23 = vld [vmem:[%s3454_s0 + $0x28] sm:$0xff]  ;;  %v90_v25 = vld [vmem:[%s3454_s0 + $0x20] sm:$0xff] }
  0x17   :  { %2198 = vmatpush3.msra.mxu0 %v98_v9  ;;  %v105_v26 = vld [vmem:[%s3454_s0 + $0x98] sm:$0xff]  ;;  %v104_v28 = vld [vmem:[%s3454_s0 + $0x90] sm:$0xff]  ;;  %v103_v30 = vld [vmem:[%s3454_s0 + $0x88] sm:$0xff] }
  0x18   :  { %2199 = vmatprep.subr.mxu0 %v113_v10  ;;  %v89_v27 = vld [vmem:[%s3454_s0 + $0x18] sm:$0xff]  ;;  %v88_v29 = vld [vmem:[%s3454_s0 + $0x10] sm:$0xff]  ;;  %v87_v31 = vld [vmem:[%s3454_s0 + $0x8] sm:$0xff] }
  0x19   :  { %2200 = vmatpush3.msra.mxu0 %v97_v11  ;;  %v102_v32 = vld [vmem:[%s3454_s0 + $0x80] sm:$0xff] }
  0x1a   :  { %2201 = vmatprep.subr.mxu0 %v112_v12  ;;  %v86_v33 = vld [vmem:[%s3454_s0] sm:$0xff] }
  0x1b   :  { %2202 = vmatpush3.msra.mxu0 %v96_v13 }
  0x1c   :  { %2203 = vmatprep.subr.mxu0 %v111_v14 }
  0x1d   :  { %2204 = vmatpush3.msra.mxu0 %v95_v15 }
  0x1e   :  { %2205 = vmatprep.subr.mxu0 %v110_v16 }
  0x1f   :  { %2206 = vmatpush3.msra.mxu0 %v94_v17 }
  0x20   :  { %2207 = vmatprep.subr.mxu0 %v109_v18 }
  0x21   :  { %2208 = vmatpush3.msra.mxu0 %v93_v19 }
  0x22   :  { %2209 = vmatprep.subr.mxu0 %v108_v20 }
  0x23   :  { %2210 = vmatpush3.msra.mxu0 %v92_v21 }
  0x24   :  { %2211 = vmatprep.subr.mxu0 %v107_v22 }
  0x25   :  { %2212 = vmatpush3.msra.mxu0 %v91_v23 }
  0x26   :  { %2213 = vmatprep.subr.mxu0 %v106_v24 }
  0x27   :  { %2214 = vmatpush3.msra.mxu0 %v90_v25 }
  0x28   :  { %2215 = vmatprep.subr.mxu0 %v105_v26 }
  0x29   :  { %2216 = vmatpush3.msra.mxu0 %v89_v27 }
  0x2a   :  { %2217 = vmatprep.subr.mxu0 %v104_v28 }
  0x2b   :  { %2218 = vmatpush3.msra.mxu0 %v88_v29 }
  0x2c   :  { %2219 = vmatprep.subr.mxu0 %v103_v30 }
  0x2d   :  { %2220 = vmatpush3.msra.mxu0 %v87_v31 }
  0x2e   :  { %2221 = vmatprep.subr.mxu0 %v102_v32 }
  0x2f   :  { %2222 = vmatpush3.msra.mxu0 %v86_v33 }
  0x30   :  { %29 = vsyncpa [#allocation5], 0  ;;  %v74_v34 = vlaneseq  ;;  %v2627_v38 = vmov 1.0   ;;  %vm212_vm2 = vcmask 523264   ;;  %v2428_v45 = vld [vmem:[%s3426_s10 + $0x34] ss:$8 sps:$4 sm:$0xff]  }
  0x31   :  { %v2430_v46 = vld [vmem:[%s3426_s10 + $0x30] ss:$8 sps:$4 sm:$0xff]   ;;  %v2431_v47 = vld [vmem:[%s3426_s10 + $0x24] ss:$8 sps:$4 sm:$0xff]   ;;  %315 = vmatprep.subr.bf16.mxu1 %v2428_v45  ;;  %v2433_v48 = vld [vmem:[%s3426_s10 + $0x20] ss:$8 sps:$4 sm:$0xff]  }
  0x32   :  { %v75_v35 = vand.u32 127, %v74_v34  ;;  %316 = vmatpush1.bf16.msra.mxu1 %v2430_v46  ;;  %v2434_v49 = vld [vmem:[%s3426_s10 + $0x14] ss:$8 sps:$4 sm:$0xff]   ;;  %v2436_v50 = vld [vmem:[%s3426_s10 + $0x10] ss:$8 sps:$4 sm:$0xff]   ;;  %v2628_v53 = vmov 0.0  }
  0x33   :  { %317 = vmatprep.subr.bf16.mxu1 %v2431_v47  ;;  %v2437_v51 = vld [vmem:[%s3426_s10 + $0x4] ss:$8 sps:$4 sm:$0xff]   ;;  %v2439_v52 = vld [vmem:[%s3426_s10] ss:$8 sps:$4 sm:$0xff]   ;;  %s3455_s27 = sld [smem:[#allocation14_spill]]  ;;  %vm2629_vm3 = vmmov 0  }
  0x34   :  { %v76_v36 = vadd.s32 128, %v75_v35  ;;  %v2011_v1 = vld [vmem:[%s3423_s7] ss:$0 sm:$0xff]  ;;  %s3456_s4 = sld [smem:[#allocation13_spill]]  ;;  %v2957_v14 = vshrl.u32 %v74_v34, 7  ;;  %s2630_s2 = smov 96  }
  0x35   :  { %v2965_v16 = vld [vmem:[%s3427_s11] sm:$0x3]  ;;  %s3457_s6 = sld [smem:[#allocation9_spill]]  ;;  %s2631_s3 = smov 80   ;;  %vm468_vm4 = vcmask 130048   ;;  %vm530_vm5 = vcmask 261120  }
  0x36   :  { %318 = vmatpush1.bf16.msra.mxu1 %v2433_v48  ;;  %v2960_v15 = vsub.s32 0, %v2957_v14  ;;  %s3458_s26 = sld [smem:[#allocation10_spill]]  ;;  %s2632_s28 = smov 112   ;;  %v2453_v45 = vld [vmem:[%s3430_s14 + $0x24] ss:$8 sps:$4 sm:$0xff]   ;;  %vm648_vm6 = vcmask 392192  }
  0x37   :  { %319 = vmatprep.subr.bf16.mxu1 %v2434_v49  ;;  %s2633_s29 = smov 64   ;;  %v2451_v46 = vld [vmem:[%s3430_s14 + $0x20] ss:$8 sps:$4 sm:$0xff]   ;;  %v2456_v47 = vld [vmem:[%s3430_s14 + $0x14] ss:$8 sps:$4 sm:$0xff]   ;;  %s3459_s1 = sld [smem:[#allocation11_spill]] }
  0x38   :  { %v257_v17 = vrot.slane %v2965_v16, %v2960_v15  ;;  %v2039_v48 = vld [vmem:[%s3424_s8] ss:$0 sm:$0xff]  ;;  %v2454_v49 = vld [vmem:[%s3430_s14 + $0x10] ss:$8 sps:$4 sm:$0xff]   ;;  %s3444_s30 = smov 16   ;;  %s3443_s23 = smov 48  }
  0x39   :  { %v2010_v63 = vld [vmem:[%s3455_s27] ss:$0 sm:$0xff]  ;;  %s3462_s24 = smov 48  }
  0x3a   :  { %320 = vmatpush1.bf16.msra.mxu1 %v2436_v50  ;;  %v2901_v5 = vld [vmem:[%s3456_s4 + $0x38] sm:$0xff]   ;;  %v2908_v7 = vld [vmem:[%s3456_s4 + $0x30] sm:$0xff]   ;;  %v2915_v8 = vld [vmem:[%s3456_s4 + $0x28] sm:$0xff]  }
  0x3b   :  { %321 = vmatprep.subr.bf16.mxu1 %v2437_v51  ;;  %v2922_v9 = vld [vmem:[%s3456_s4 + $0x20] sm:$0xff]   ;;  %v2929_v10 = vld [vmem:[%s3456_s4 + $0x18] sm:$0xff]   ;;  %v2936_v11 = vld [vmem:[%s3456_s4 + $0x10] sm:$0xff]  }
  0x3c   :  { %v2943_v12 = vld [vmem:[%s3456_s4 + $0x8] sm:$0xff]   ;;  %v2951_v13 = vld [vmem:[%s3456_s4] sm:$0xff]  }
  0x3d   :  { %v2974_v24 = vld [vmem:[%s3457_s6] sm:$0xff] }
  0x3e   :  { %322 = vmatpush1.bf16.msra.mxu1 %v2439_v52  ;;  %v2979_v25 = vld [vmem:[%s3458_s26] sm:$0xff]  ;;  %s3445_s26 = smov 32  }
  0x3f   :  { %2314 = vmatprep.subr.bf16.mxu1 %v2628_v53  ;;  %v2459_v51 = vld [vmem:[%s3430_s14 + $0x4] ss:$8 sps:$4 sm:$0xff]   ;;  %v2040_v52 = vld [vmem:[%s3425_s9] ss:$0 sm:$0xff] }
  0x8a   :  { %v79_v37 = vpop.permute.xlu0 %78 }
  0x8b   :  { %vm80_vm0 = vcmp.eq.s32.totalorder %v75_v35, %v79_v37  ;;  %vm81_vm1 = vcmp.eq.s32.totalorder %v76_v36, %v79_v37 }
  0x8c   :  { %2008 = vmatprep.mubr.msk.f32.mxu0 %vm81_vm1, %v2627_v38 }
  0x8d   :  { %2009 = vmatmul.mubr.msk.f32.vlgmr.msra.gmra.mxu0 %vm80_vm0, %v2627_v38 }
 0x14d   :  { %v2223_v39 = vpop.f32.mrf.mxu0 }
 0x14f   :  { %v2224_v40 = vpop.f32.mrf.mxu0 }
 0x150   :  { %v2856_v41 = vadd.f32 %v2224_v40, %v2223_v39 }
 0x152   :  { %v213_v42 = vsel %vm212_vm2, %v2856_v41, 0.0  ;;  %v218_v43 = vmul.f32 %v2856_v41, %v2856_v41 }
 0x153   :  { %214 = vadd.xlane.f32.xlu0 %v213_v42  ;;  %v2450_v42 = vld [vmem:[%s3430_s14 + $0x34] ss:$8 sps:$4 sm:$0xff]  }
 0x154   :  { %v219_v44 = vsel %vm212_vm2, %v218_v43, 0.0 }
 0x155   :  { %220 = vadd.xlane.f32.xlu1 %v219_v44  ;;  %v2448_v44 = vld [vmem:[%s3430_s14 + $0x30] ss:$8 sps:$4 sm:$0xff]  }
 0x1dc   :  { %v215_v54 = vpop.xlane.xlu0 %214 }
 0x1dd   :  { %v217_v55 = vmul.f32 0.015625, %v215_v54  ;;  %v2457_v54 = vld [vmem:[%s3430_s14] ss:$8 sps:$4 sm:$0xff]  }
 0x1de   :  { %v221_v56 = vpop.xlane.xlu1 %220 }
 0x1df   :  { %v223_v57 = vmul.f32 %v217_v55, %v217_v55  ;;  %v222_v58 = vmul.f32 0.015625, %v221_v56  ;;  %v225_v61 = vsub.f32 %v2856_v41, %v217_v55 }
 0x1e1   :  { %v224_v59 = vsub.f32 %v222_v58, %v223_v57  ;;  %v3031_v58 = vld [vmem:[%s3459_s1] sm:$0xff] }
 0x1e3   :  { %v226_v60 = vadd.f32 1e-05, %v224_v59  ;;  %v3036_v59 = vld [vmem:[%s3459_s1 + $0x10] sm:$0xff] }
 0x1e5   :  { %2536 = vrsqrt.f32 %v226_v60 }
 0x1f2   :  { %v2537_v62 = vpop.eup %2536 }
 0x1f3   :  { %v2892_v0 = vmul.f32 %v2537_v62, %v225_v61 }
 0x1f5   :  { %v235_v2 = vmul.f32 %v2010_v63, %v2892_v0  ;;  %v741_v50 = vmul.f32 %v2039_v48, %v2892_v0  ;;  %v3042_v63 = vld [vmem:[%s3459_s1 + $0x8] sm:$0xff] }
 0x1f7   :  { %v242_v4 = vadd.f32 %v2011_v1, %v235_v2  ;;  %v748_v55 = vadd.f32 %v2040_v52, %v741_v50  ;;  %v3049_v2 = vld [vmem:[%s3459_s1 + $0x18] sm:$0xff] }
 0x1f9   :  { %v251_v6 = vpack.c.bf16 %v242_v4, %v242_v4  ;;  %v757_v56 = vpack.c.bf16 %v748_v55, %v748_v55 }
 0x1fb   :  { %2020 = vmatmul.mubr.msk.bf16.vlgmr.msra.gmra.mxu1 %vm212_vm2, %v251_v6 }
 0x1fc   :  { %2315 = vmatpush3.bf16.msra.mxu1 %v2901_v5  ;;  %2330 = vmatprep.mubr.msk.bf16.mxu1 %vm2629_vm3, %v2628_v53 }
 0x1fd   :  { %2316 = vmatprep.subr.bf16.mxu1 %v2628_v53 }
 0x200   :  { %2317 = vmatpush3.bf16.msra.mxu1 %v2908_v7 }
 0x201   :  { %2318 = vmatprep.subr.bf16.mxu1 %v2628_v53 }
 0x204   :  { %2319 = vmatpush3.bf16.msra.mxu1 %v2915_v8 }
 0x205   :  { %2320 = vmatprep.subr.bf16.mxu1 %v2628_v53 }
 0x208   :  { %2321 = vmatpush3.bf16.msra.mxu1 %v2922_v9 }
 0x209   :  { %2322 = vmatprep.subr.bf16.mxu1 %v2628_v53 }
 0x20c   :  { %2323 = vmatpush3.bf16.msra.mxu1 %v2929_v10 }
 0x20d   :  { %2324 = vmatprep.subr.bf16.mxu1 %v2628_v53 }
 0x210   :  { %2325 = vmatpush3.bf16.msra.mxu1 %v2936_v11 }
 0x211   :  { %2326 = vmatprep.subr.bf16.mxu1 %v2628_v53 }
 0x214   :  { %2327 = vmatpush3.bf16.msra.mxu1 %v2943_v12 }
 0x215   :  { %2328 = vmatprep.subr.bf16.mxu1 %v2628_v53 }
 0x218   :  { %2329 = vmatpush3.bf16.msra.mxu1 %v2951_v13 }
 0x2bb   :  { %v341_v18 = vpop.f32.mrf.mxu1 }
 0x2bc   :  { %v342_v19 = vadd.f32 %v341_v18, %v257_v17 }
 0x2bd   :  { %v2969_v20 = vpop.f32.mrf.mxu1 }
 0x2be   :  { %v348_v21 = vpack.c.bf16 %v342_v19, %v342_v19  ;;  %v437_v27 = vmul.f32 %v342_v19, %v2974_v24 }
 0x2bf   :  { %v345_v22 = vpop.f32.mrf.mxu1 }
 0x2c0   :  { %2331 = vmatmul.mubr.bf16.vlgmr.msra.gmra.mxu1 %v348_v21 }
 0x2c1   :  { %v346_v23 = vpop.f32.mrf.mxu1 }
 0x2c2   :  { %v3059_v23 = vsub.s32 1, %v2957_v14 }
 0x380   :  { %v431_v26 = vpop.f32.mrf.mxu1 }
 0x381   :  { %v438_v28 = vmul.f32 %v431_v26, %v2979_v25 }
 0x382   :  { %v2332_v29 = vpop.f32.mrf.mxu1 }
 0x383   :  { %v439_v30 = vadd.f32 %v438_v28, %v437_v27  ;;  %v261_v28 = vrot.slane %v2965_v16, %v3059_v23 }
 0x384   :  { %v434_v31 = vpop.f32.mrf.mxu1 }
 0x385   :  { %444 = vrot.lane.b32.xlu1 %v439_v30, %s2630_s2 }
 0x386   :  { %v2333_v32 = vpop.f32.mrf.mxu1 }
 0x389   :  { %447 = vrot.lane.b32.xlu1 %v439_v30, %s2631_s3 }
 0x38d   :  { %441 = vrot.lane.b32.xlu1 %v439_v30, %s2632_s28 }
 0x3f7   :  { %v445_v33 = vpop.permute.xlu1 %444 }
 0x3fb   :  { %v448_v34 = vpop.permute.xlu1 %447 }
 0x3fc   :  { %v461_v35 = vpack.c.bf16 %v448_v34, %v445_v33 }
 0x3fe   :  { %466 = vrot.lane.b32.xlu1 %v461_v35, %s2633_s29 }
 0x3ff   :  { %v442_v36 = vpop.permute.xlu1 %441 }
 0x400   :  { %v460_v37 = vpack.c.bf16 %v442_v36, %v439_v30  ;;  %v344_v30 = vadd.f32 %v2969_v20, %v261_v28  ;;  %v2461_v28 = vld [vmem:[%s3428_s12 + $0x10] sm:$0xff]  }
 0x402   :  { %464 = vrot.lane.b32.xlu1 %v460_v37, %s2633_s29  ;;  %2338 = vmatprep.mubr.msk.bf16.mxu0 %vm468_vm4, %v460_v37 }
 0x470   :  { %v467_v38 = vpop.permute.xlu1 %466 }
 0x471   :  { %v479_v39 = vsel %vm468_vm4, %v467_v38, 0  ;;  %2410 = vmatprep.subr.msk.bf16.mxu0 %vm468_vm4, %v467_v38 }
 0x472   :  { %2335 = vmatpush3.bf16.xpose.msra.mxu0 %v479_v39 }
 0x474   :  { %v465_v40 = vpop.permute.xlu1 %464 }
 0x475   :  { %2411 = vmatprep.subr.msk.bf16.mxu0 %vm468_vm4, %v465_v40  ;;  %v476_v43 = vsel %vm468_vm4, %v465_v40, 0 }
 0x47a   :  { %2337 = vmatpush3.bf16.xpose.msra.mxu0 %v476_v43 }
 0x47b   :  { %821 = vmatprep.subr.bf16.mxu0 %v2450_v42 }
 0x481   :  { %2339 = vmatmul.mubr.msk.bf16.vlgmr.msra.gmra.mxu0 %vm468_vm4, %v461_v35 }
 0x482   :  { %822 = vmatpush1.bf16.msra.mxu0 %v2448_v44  ;;  %845 = vmatprep.mubr.bf16.mxu0 %v2626_v3 }
 0x483   :  { %823 = vmatprep.subr.bf16.mxu0 %v2453_v45 }
 0x486   :  { %824 = vmatpush1.bf16.msra.mxu0 %v2451_v46 }
 0x487   :  { %825 = vmatprep.subr.bf16.mxu0 %v2456_v47 }
 0x48a   :  { %826 = vmatpush1.bf16.msra.mxu0 %v2454_v49 }
 0x48b   :  { %827 = vmatprep.subr.bf16.mxu0 %v2459_v51 }
 0x48e   :  { %828 = vmatpush1.bf16.msra.mxu0 %v2457_v54 }
 0x491   :  { %2049 = vmatmul.mubr.msk.bf16.vlgmr.msra.gmra.mxu0 %vm212_vm2, %v757_v56 }
 0x492   :  { %1182 = vmatprep.mubr.bf16.mxu0 %v2626_v3 }
 0x541   :  { %v2340_v57 = vpop.f32.mrf.mxu0 }
 0x542   :  { %v524_v0 = vadd.f32 %v2340_v57, %v3036_v59 }
 0x543   :  { %v515_v60 = vpop.f32.mrf.mxu0 }
 0x544   :  { %v516_v61 = vadd.f32 %v515_v60, %v3031_v58  ;;  %v537_v19 = vsel %vm530_vm5, %v524_v0, -inf }
 0x545   :  { %v2341_v62 = vpop.f32.mrf.mxu0 }
 0x546   :  { %v531_v1 = vsel %vm530_vm5, %v516_v61, -inf  ;;  %v527_v17 = vadd.f32 %v2341_v62, %v3049_v2 }
 0x547   :  { %v518_v4 = vpop.f32.mrf.mxu0  ;;  %532 = vmax.xlane.f32.xlu0 %v531_v1 }
 0x548   :  { %v519_v6 = vadd.f32 %v518_v4, %v3042_v63  ;;  %v540_v21 = vsel %vm530_vm5, %v527_v17, -inf }
 0x54a   :  { %v534_v18 = vsel %vm530_vm5, %v519_v6, -inf }
 0x54b   :  { %535 = vmax.xlane.f32.xlu1 %v534_v18  ;;  %538 = vmax.xlane.f32.xlu0 %v537_v19 }
 0x54f   :  { %541 = vmax.xlane.f32.xlu0 %v540_v21 }
 0x551   :  { %v3056_v22 = vpop.f32.mrf.mxu0 }
 0x553   :  { %v3061_v26 = vpop.f32.mrf.mxu0 }
 0x555   :  { %v851_v27 = vpop.f32.mrf.mxu0 }
 0x556   :  { %v2460_v27 = vld [vmem:[%s3428_s12 + $0x18] sm:$0xff]  }
 0x557   :  { %v852_v29 = vpop.f32.mrf.mxu0 }
 0x558   :  { %v2462_v29 = vld [vmem:[%s3428_s12 + $0x8] sm:$0xff]  }
 0x55c   :  { %457 = vrot.lane.b32.xlu1 %v344_v30, %s2631_s3 }
 0x565   :  { %454 = vrot.lane.b32.xlu0 %v344_v30, %s2630_s2 }
 0x5d0   :  { %v533_v31 = vpop.xlane.xlu0 %532 }
 0x5d1   :  { %v543_v32 = vsub.f32 %v516_v61, %v533_v31  ;;  %v2464_v31 = vld [vmem:[%s3432_s16 + $0x78] sm:$0xff]  }
 0x5d3   :  { %v547_v36 = vmul.f32 1.442695, %v543_v32 }
 0x5d4   :  { %v539_v33 = vpop.xlane.xlu0 %538  ;;  %v536_v35 = vpop.xlane.xlu1 %535 }
 0x5d5   :  { %v545_v34 = vsub.f32 %v524_v0, %v539_v33  ;;  %v544_v39 = vsub.f32 %v519_v6, %v536_v35 }
 0x5d7   :  { %v551_v14 = vmul.f32 1.442695, %v545_v34  ;;  %v549_v43 = vmul.f32 1.442695, %v544_v39 }
 0x5d8   :  { %v542_v37 = vpop.xlane.xlu0 %541  ;;  %v458_v16 = vpop.permute.xlu1 %457 }
 0x5d9   :  { %v546_v38 = vsub.f32 %v527_v17, %v542_v37  ;;  %2538 = vpow2.f32 %v551_v14  ;;  %v758_v14 = vld [vmem:[%s3431_s15] sm:$0x3] }
 0x5da   :  { %2540 = vpow2.f32 %v547_v36  ;;  %v767_v36 = vrot.slane %v758_v14, %v3059_v23 }
 0x5db   :  { %v553_v40 = vmul.f32 1.442695, %v546_v38 }
 0x5dc   :  { %v455_v42 = vpop.permute.xlu0 %454  ;;  %v850_v37 = vadd.f32 %v3061_v26, %v767_v36 }
 0x5dd   :  { %v578_v20 = vpack.c.bf16 %v458_v16, %v455_v42  ;;  %2542 = vpow2.f32 %v553_v40 }
 0x5de   :  { %2544 = vpow2.f32 %v549_v43  ;;  %v857_v38 = vmul.f32 0.044715, %v850_v37 }
 0x5df   :  { %2342 = vmatprep.subr.bf16.mxu1 %v578_v20 }
 0x5e0   :  { %2343 = vmatpush3.bf16.msra.mxu1 %v578_v20  ;;  %v859_v39 = vmul.f32 %v857_v38, %v850_v37  ;;  %v763_v20 = vrot.slane %v758_v14, %v2960_v15 }
 0x5e2   :  { %v861_v16 = vmul.f32 %v859_v39, %v850_v37  ;;  %v848_v43 = vadd.f32 %v3056_v22, %v763_v20  ;;  %v2465_v22 = vld [vmem:[%s3432_s16 + $0x38] sm:$0xff]   ;;  %v2050_v20 = vld [vmem:[%s3433_s17] ss:$0 sm:$0xff] }
 0x5e4   :  { %v863_v40 = vadd.f32 %v861_v16, %v850_v37 }
 0x5e6   :  { %v2539_v44 = vpop.eup %2538  ;;  %v865_v42 = vmul.f32 0.7978846, %v863_v40 }
 0x5e7   :  { %v561_v45 = vsel %vm530_vm5, %v2539_v44, 0.0  ;;  %v2541_v46 = vpop.eup %2540 }
 0x5e8   :  { %562 = vadd.xlane.f32.xlu0 %v561_v45  ;;  %v555_v47 = vsel %vm530_vm5, %v2541_v46, 0.0 }
 0x5ea   :  { %v2543_v48 = vpop.eup %2542 }
 0x5eb   :  { %v564_v49 = vsel %vm530_vm5, %v2543_v48, 0.0  ;;  %v2545_v50 = vpop.eup %2544 }
 0x5ec   :  { %556 = vadd.xlane.f32.xlu0 %v555_v47  ;;  %v558_v51 = vsel %vm530_vm5, %v2545_v50, 0.0 }
 0x5f0   :  { %565 = vadd.xlane.f32.xlu0 %v564_v49 }
 0x5f4   :  { %559 = vadd.xlane.f32.xlu0 %v558_v51 }
 0x60a   :  { %451 = vrot.lane.b32.xlu0 %v344_v30, %s2632_s28 }
 0x671   :  { %v563_v52 = vpop.xlane.xlu0 %562 }
 0x675   :  { %v557_v54 = vpop.xlane.xlu0 %556 }
 0x679   :  { %v566_v55 = vpop.xlane.xlu0 %565 }
 0x67a   :  { %2546 = vrcp.f32 %v566_v55 }
 0x67b   :  { %2548 = vrcp.f32 %v557_v54 }
 0x67c   :  { %2550 = vrcp.f32 %v563_v52 }
 0x67d   :  { %v560_v56 = vpop.xlane.xlu0 %559 }
 0x67e   :  { %2552 = vrcp.f32 %v560_v56 }
 0x67f   :  { %2554 = vtanh.f32 %v865_v42  ;;  %v2033_v42 = vld [vmem:[%s3429_s13] ss:$0 sm:$0xff] }
 0x681   :  { %v452_v57 = vpop.permute.xlu0 %451 }
 0x682   :  { %v577_v60 = vpack.c.bf16 %v452_v57, %v344_v30  ;;  %v2463_v30 = vld [vmem:[%s3428_s12] sm:$0xff]  }
 0x684   :  { %2344 = vmatprep.subr.bf16.mxu1 %v577_v60 }
 0x685   :  { %2345 = vmatpush3.bf16.msra.mxu1 %v577_v60 }
 0x686   :  { %2350 = vmatprep.subr.bf16.mxu1 %v2628_v53 }
 0x687   :  { %v2547_v61 = vpop.eup %2546 }
 0x688   :  { %v2549_v62 = vpop.eup %2548  ;;  %v574_v4 = vmul.f32 %v2547_v61, %v2543_v48  ;;  %v2466_v61 = vld [vmem:[%s3432_s16 + $0x70] sm:$0xff]  }
 0x689   :  { %v2551_v0 = vpop.eup %2550  ;;  %v571_v6 = vmul.f32 %v2549_v62, %v2541_v46 }
 0x68a   :  { %v573_v18 = vmul.f32 %v2551_v0, %v2539_v44  ;;  %v856_v44 = vmul.f32 0.044715, %v848_v43  ;;  %v2467_v0 = vld [vmem:[%s3432_s16 + $0x30] sm:$0xff]  }
 0x68b   :  { %v2553_v1 = vpop.eup %2552 }
 0x68c   :  { %v572_v17 = vmul.f32 %v2553_v1, %v2545_v50  ;;  %v576_v21 = vpack.c.bf16 %v574_v4, %v573_v18  ;;  %v2555_v45 = vpop.eup %2554  ;;  %v858_v46 = vmul.f32 %v856_v44, %v848_v43  ;;  %v855_v50 = vmul.f32 0.5, %v850_v37  ;;  %v2468_v4 = vld [vmem:[%s3432_s16 + $0x68] sm:$0xff]   ;;  %v2471_v18 = vld [vmem:[%s3432_s16 + $0x20] sm:$0xff]  }
 0x68d   :  { %v869_v47 = vadd.f32 1.0, %v2555_v45 }
 0x68e   :  { %v575_v19 = vpack.c.bf16 %v572_v17, %v571_v6  ;;  %v860_v51 = vmul.f32 %v858_v46, %v848_v43  ;;  %v2469_v6 = vld [vmem:[%s3432_s16 + $0x28] sm:$0xff]   ;;  %v2470_v17 = vld [vmem:[%s3432_s16 + $0x60] sm:$0xff]  }
 0x68f   :  { %v871_v52 = vmul.f32 %v869_v47, %v855_v50 }
 0x690   :  { %2346 = vmatprep.mubr.msk.bf16.mxu1 %vm530_vm5, %v575_v19  ;;  %v862_v57 = vadd.f32 %v860_v51, %v848_v43  ;;  %v2472_v19 = vld [vmem:[%s3432_s16 + $0x58] sm:$0xff]  }
 0x691   :  { %2347 = vmatmul.mubr.msk.bf16.vlgmr.msra.gmra.mxu1 %vm530_vm5, %v576_v21  ;;  %v905_v62 = vpack.c.bf16 %v871_v52, %v871_v52  ;;  %v2473_v21 = vld [vmem:[%s3432_s16 + $0x18] sm:$0xff]  }
 0x692   :  { %2358 = vmatprep.mubr.msk.bf16.mxu1 %vm2629_vm3, %v2628_v53  ;;  %2351 = vmatpush3.bf16.msra.mxu1 %v2460_v27  ;;  %v864_v1 = vmul.f32 0.7978846, %v862_v57  ;;  %v2474_v27 = vld [vmem:[%s3432_s16 + $0x50] sm:$0xff]  }
 0x693   :  { %2352 = vmatprep.subr.bf16.mxu1 %v2628_v53  ;;  %v2486_v57 = vld [vmem:[%s3426_s10 + $0x50] ss:$8 sps:$4 sm:$0xff]  }
 0x694   :  { %2556 = vtanh.f32 %v864_v1 }
 0x696   :  { %2353 = vmatpush3.bf16.msra.mxu1 %v2461_v28  ;;  %v2475_v28 = vld [vmem:[%s3432_s16 + $0x10] sm:$0xff]  }
 0x697   :  { %2354 = vmatprep.subr.bf16.mxu1 %v2628_v53 }
 0x69a   :  { %2355 = vmatpush3.bf16.msra.mxu1 %v2462_v29  ;;  %v2476_v29 = vld [vmem:[%s3432_s16 + $0x48] sm:$0xff]  }
 0x69b   :  { %2356 = vmatprep.subr.bf16.mxu1 %v2628_v53 }
 0x69e   :  { %2357 = vmatpush3.bf16.msra.mxu1 %v2463_v30 }
 0x69f   :  { %2248 = vmatprep.subr.bf16.mxu1 %v2464_v31  ;;  %v2477_v31 = vld [vmem:[%s3432_s16 + $0x8] sm:$0xff]  }
 0x6a1   :  { %v2557_v30 = vpop.eup %2556 }
 0x751   :  { %v2348_v32 = vpop.f32.mrf.mxu1 }
 0x752   :  { %639 = vrot.lane.b32.xlu1 %v2348_v32, %s3445_s26  ;;  %v2478_v32 = vld [vmem:[%s3432_s16 + $0x40] sm:$0xff]   ;;  %s3461_s26 = smov 16  }
 0x753   :  { %v619_v33 = vpop.f32.mrf.mxu1 }
 0x755   :  { %v2349_v34 = vpop.f32.mrf.mxu1 }
 0x757   :  { %v622_v35 = vpop.f32.mrf.mxu1 }
 0x758   :  { %635 = vrot.lane.b32.xlu0 %v622_v35, %s3444_s30  ;;  %v2479_v35 = vld [vmem:[%s3432_s16] sm:$0xff]  }
 0x75c   :  { %643 = vrot.lane.b32.xlu0 %v2349_v34, %s3443_s23  ;;  %v854_v34 = vmul.f32 0.5, %v848_v43  ;;  %s3460_s23 = smov 32  }
 0x7c4   :  { %v640_v26 = vpop.permute.xlu1 %639 }
 0x7ca   :  { %v636_v48 = vpop.permute.xlu0 %635 }
 0x7cb   :  { %v646_v49 = vsel %vm468_vm4, %v619_v33, %v636_v48  ;;  %v868_v33 = vadd.f32 1.0, %v2557_v30 }
 0x7cc   :  { %v647_v54 = vsel %vm530_vm5, %v646_v49, %v640_v26 }
 0x7cd   :  { %v870_v14 = vmul.f32 %v868_v33, %v854_v34 }
 0x7ce   :  { %v644_v55 = vpop.permute.xlu0 %643 }
 0x7cf   :  { %v649_v56 = vsel %vm648_vm6, %v647_v54, %v644_v55  ;;  %v904_v36 = vpack.c.bf16 %v870_v14, %v870_v14  ;;  %v2480_v54 = vld [vmem:[%s3426_s10 + $0x70] ss:$8 sps:$4 sm:$0xff]   ;;  %v2482_v55 = vld [vmem:[%s3426_s10 + $0x74] ss:$8 sps:$4 sm:$0xff]  }
 0x7d0   :  { %v658_v60 = vpack.c.bf16 %v649_v56, %v649_v56  ;;  %1158 = vmatprep.subr.bf16.mxu0 %v2482_v55  ;;  %v2483_v56 = vld [vmem:[%s3426_s10 + $0x60] ss:$8 sps:$4 sm:$0xff]  }
 0x7d1   :  { %1159 = vmatpush1.bf16.msra.mxu0 %v2480_v54 }
 0x7d2   :  { %2359 = vmatmul.mubr.msk.bf16.vlgmr.msra.gmra.mxu1 %vm212_vm2, %v658_v60  ;;  %v2491_v60 = vld [vmem:[%s3426_s10 + $0x44] ss:$8 sps:$4 sm:$0xff]  }
 0x7d3   :  { %2249 = vmatpush3.bf16.msra.mxu1 %v2465_v22  ;;  %1041 = vmatprep.mubr.bf16.mxu1 %v905_v62  ;;  %v2488_v22 = vld [vmem:[%s3426_s10 + $0x54] ss:$8 sps:$4 sm:$0xff]  }
 0x7d4   :  { %2250 = vmatprep.subr.bf16.mxu1 %v2466_v61  ;;  %v2489_v61 = vld [vmem:[%s3426_s10 + $0x40] ss:$8 sps:$4 sm:$0xff]  }
 0x7d7   :  { %2251 = vmatpush3.bf16.msra.mxu1 %v2467_v0 }
 0x7d8   :  { %2252 = vmatprep.subr.bf16.mxu1 %v2468_v4 }
 0x7db   :  { %2253 = vmatpush3.bf16.msra.mxu1 %v2469_v6 }
 0x7dc   :  { %2254 = vmatprep.subr.bf16.mxu1 %v2470_v17 }
 0x7df   :  { %2255 = vmatpush3.bf16.msra.mxu1 %v2471_v18 }
 0x7e0   :  { %2256 = vmatprep.subr.bf16.mxu1 %v2472_v19 }
 0x7e3   :  { %2257 = vmatpush3.bf16.msra.mxu1 %v2473_v21 }
 0x7e4   :  { %2258 = vmatprep.subr.bf16.mxu1 %v2474_v27  ;;  %v2069_v27 = vld [vmem:[%s3455_s27 + $0x1] ss:$0 sm:$0xff] }
 0x7e7   :  { %2259 = vmatpush3.bf16.msra.mxu1 %v2475_v28 }
 0x7e8   :  { %2260 = vmatprep.subr.bf16.mxu1 %v2476_v29  ;;  %v2070_v29 = vld [vmem:[%s3423_s7 + $0x1] ss:$0 sm:$0xff] }
 0x7eb   :  { %2261 = vmatpush3.bf16.msra.mxu1 %v2477_v31 }
 0x7ec   :  { %2262 = vmatprep.subr.bf16.mxu1 %v2478_v32 }
 0x7ef   :  { %2263 = vmatpush3.bf16.msra.mxu1 %v2479_v35 }
 0x7f2   :  { %1042 = vmatmul.mubr.bf16.vlgmr.msra.gmra.mxu1 %v904_v36 }
 0x892   :  { %v727_v37 = vpop.f32.mrf.mxu1 }
 0x893   :  { %v728_v46 = vadd.f32 %v2033_v42, %v727_v37 }
 0x894   :  { %v2360_v38 = vpop.f32.mrf.mxu1 }
 0x896   :  { %v730_v39 = vpop.f32.mrf.mxu1 }
 0x898   :  { %v2361_v16 = vpop.f32.mrf.mxu1 }
 0x8b2   :  { %v2264_v40 = vpop.f32.mrf.mxu1 }
 0x8b4   :  { %v2265_v43 = vpop.f32.mrf.mxu1 }
 0x8b5   :  { %v2266_v44 = vadd.f32 %v2265_v43, %v2264_v40 }
 0x8b6   :  { %v2267_v45 = vpop.f32.mrf.mxu1 }
 0x8b7   :  { %v1044_v47 = vadd.f32 %v2266_v44, %v2050_v20 }
 0x8b8   :  { %v2268_v48 = vpop.f32.mrf.mxu1 }
 0x8b9   :  { %v1049_v49 = vadd.f32 %v1044_v47, %v728_v46 }
 0x8bb   :  { %v3162_v50 = vadd.f32 %v2856_v41, %v1049_v49  ;;  %v2485_v41 = vld [vmem:[%s3426_s10 + $0x64] ss:$8 sps:$4 sm:$0xff]  }
 0x8bc   :  { %1160 = vmatprep.subr.bf16.mxu0 %v2485_v41 }
 0x8bd   :  { %v1055_v51 = vsel %vm212_vm2, %v3162_v50, 0.0  ;;  %v1059_v26 = vmul.f32 %v3162_v50, %v3162_v50  ;;  %1161 = vmatpush1.bf16.msra.mxu0 %v2483_v56 }
 0x8be   :  { %1056 = vadd.xlane.f32.xlu1 %v1055_v51  ;;  %1162 = vmatprep.subr.bf16.mxu0 %v2488_v22 }
 0x8bf   :  { %v1060_v52 = vsel %vm212_vm2, %v1059_v26, 0.0 }
 0x8c0   :  { %1061 = vadd.xlane.f32.xlu0 %v1060_v52 }
 0x8c1   :  { %1163 = vmatpush1.bf16.msra.mxu0 %v2486_v57 }
 0x8c2   :  { %1164 = vmatprep.subr.bf16.mxu0 %v2491_v60 }
 0x8c5   :  { %1165 = vmatpush1.bf16.msra.mxu0 %v2489_v61 }
 0x8c6   :  { %2362 = vmatprep.subr.bf16.mxu0 %v2628_v53 }
 0x947   :  { %v1057_v62 = vpop.xlane.xlu1 %1056 }
 0x948   :  { %v1058_v0 = vmul.f32 0.015625, %v1057_v62 }
 0x949   :  { %v1062_v1 = vpop.xlane.xlu0 %1061 }
 0x94a   :  { %v1064_v4 = vmul.f32 %v1058_v0, %v1058_v0  ;;  %v1063_v6 = vmul.f32 0.015625, %v1062_v1  ;;  %v1066_v19 = vsub.f32 %v3162_v50, %v1058_v0 }
 0x94c   :  { %v1065_v17 = vsub.f32 %v1063_v6, %v1064_v4 }
 0x94e   :  { %v1067_v18 = vadd.f32 1e-05, %v1065_v17 }
 0x950   :  { %2558 = vrsqrt.f32 %v1067_v18 }
 0x95d   :  { %v2559_v21 = vpop.eup %2558 }
 0x95e   :  { %v3198_v28 = vmul.f32 %v2559_v21, %v1066_v19 }
 0x960   :  { %v1076_v30 = vmul.f32 %v2069_v27, %v3198_v28 }
 0x962   :  { %v1083_v31 = vadd.f32 %v2070_v29, %v1076_v30 }
 0x964   :  { %v1093_v32 = vpack.c.bf16 %v1083_v31, %v1083_v31 }
 0x966   :  { %2088 = vmatmul.mubr.msk.bf16.vlgmr.msra.gmra.mxu0 %vm212_vm2, %v1093_v32 }
 0x967   :  { %2363 = vmatpush3.bf16.msra.mxu0 %v2901_v5  ;;  %2378 = vmatprep.mubr.msk.bf16.mxu0 %vm2629_vm3, %v2628_v53  ;;  %v2079_v5 = vld [vmem:[%s3427_s11 + $0x2] sm:$0x3] }
 0x968   :  { %2364 = vmatprep.subr.bf16.mxu0 %v2628_v53 }
 0x96b   :  { %2365 = vmatpush3.bf16.msra.mxu0 %v2908_v7  ;;  %v1100_v7 = vrot.slane %v2079_v5, %v2960_v15 }
 0x96c   :  { %2366 = vmatprep.subr.bf16.mxu0 %v2628_v53 }
 0x96f   :  { %2367 = vmatpush3.bf16.msra.mxu0 %v2915_v8 }
 0x970   :  { %2368 = vmatprep.subr.bf16.mxu0 %v2628_v53 }
 0x973   :  { %2369 = vmatpush3.bf16.msra.mxu0 %v2922_v9 }
 0x974   :  { %2370 = vmatprep.subr.bf16.mxu0 %v2628_v53 }
 0x977   :  { %2371 = vmatpush3.bf16.msra.mxu0 %v2929_v10 }
 0x978   :  { %2372 = vmatprep.subr.bf16.mxu0 %v2628_v53 }
 0x97b   :  { %2373 = vmatpush3.bf16.msra.mxu0 %v2936_v11 }
 0x97c   :  { %2374 = vmatprep.subr.bf16.mxu0 %v2628_v53 }
 0x97f   :  { %2375 = vmatpush3.bf16.msra.mxu0 %v2943_v12 }
 0x980   :  { %2376 = vmatprep.subr.bf16.mxu0 %v2628_v53 }
 0x983   :  { %2377 = vmatpush3.bf16.msra.mxu0 %v2951_v13 }
 0x984   :  { %2398 = vmatprep.subr.bf16.mxu0 %v2628_v53 }
 0xa26   :  { %v1184_v8 = vpop.f32.mrf.mxu0 }
 0xa27   :  { %v1185_v9 = vadd.f32 %v1184_v8, %v1100_v7 }
 0xa28   :  { %v1186_v10 = vpop.f32.mrf.mxu0 }
 0xa29   :  { %v1191_v11 = vpack.c.bf16 %v1185_v9, %v1185_v9  ;;  %v1232_v13 = vmul.f32 %v1185_v9, %v2974_v24 }
 0xa2a   :  { %v1188_v33 = vpop.f32.mrf.mxu0 }
 0xa2b   :  { %2379 = vmatmul.mubr.bf16.vlgmr.msra.gmra.mxu0 %v1191_v11 }
 0xa2c   :  { %v1189_v34 = vpop.f32.mrf.mxu0  ;;  %2406 = vmatprep.mubr.msk.bf16.mxu0 %vm2629_vm3, %v2628_v53 }
 0xaeb   :  { %v1226_v12 = vpop.f32.mrf.mxu0 }
 0xaec   :  { %v1233_v35 = vmul.f32 %v1226_v12, %v2979_v25 }
 0xaed   :  { %v2380_v14 = vpop.f32.mrf.mxu0 }
 0xaee   :  { %v1234_v36 = vadd.f32 %v1233_v35, %v1232_v13  ;;  %v2494_v13 = vld [vmem:[%s3430_s14 + $0x74] ss:$8 sps:$4 sm:$0xff]  }
 0xaef   :  { %v1229_v37 = vpop.f32.mrf.mxu0 }
 0xaf0   :  { %1242 = vrot.lane.b32.xlu1 %v1234_v36, %s2631_s3  ;;  %1239 = vrot.lane.b32.xlu0 %v1234_v36, %s2630_s2 }
 0xaf1   :  { %v2381_v38 = vpop.f32.mrf.mxu0 }
 0xaf4   :  { %1236 = vrot.lane.b32.xlu1 %v1234_v36, %s2632_s28 }
 0xb62   :  { %v1243_v39 = vpop.permute.xlu1 %1242  ;;  %v1240_v16 = vpop.permute.xlu0 %1239 }
 0xb63   :  { %v1256_v40 = vpack.c.bf16 %v1243_v39, %v1240_v16 }
 0xb65   :  { %1261 = vrot.lane.b32.xlu0 %v1256_v40, %s2633_s29 }
 0xb66   :  { %v1237_v42 = vpop.permute.xlu1 %1236 }
 0xb67   :  { %v1255_v20 = vpack.c.bf16 %v1237_v42, %v1234_v36 }
 0xb69   :  { %1259 = vrot.lane.b32.xlu1 %v1255_v20, %s2633_s29  ;;  %2386 = vmatprep.mubr.msk.bf16.mxu1 %vm468_vm4, %v1255_v20  ;;  %v2492_v20 = vld [vmem:[%s3430_s14 + $0x70] ss:$8 sps:$4 sm:$0xff]  }
 0xbd7   :  { %v1262_v24 = vpop.permute.xlu0 %1261 }
 0xbd8   :  { %v1273_v25 = vsel %vm468_vm4, %v1262_v24, 0  ;;  %2412 = vmatprep.subr.msk.bf16.mxu1 %vm468_vm4, %v1262_v24 }
 0xbd9   :  { %2383 = vmatpush3.bf16.xpose.msra.mxu1 %v1273_v25  ;;  %v2497_v25 = vld [vmem:[%s3430_s14 + $0x64] ss:$8 sps:$4 sm:$0xff]  }
 0xbdb   :  { %v1260_v43 = vpop.permute.xlu1 %1259 }
 0xbdc   :  { %2413 = vmatprep.subr.msk.bf16.mxu1 %vm468_vm4, %v1260_v43  ;;  %v1270_v44 = vsel %vm468_vm4, %v1260_v43, 0  ;;  %v2495_v43 = vld [vmem:[%s3430_s14 + $0x60] ss:$8 sps:$4 sm:$0xff]  }
 0xbe1   :  { %2385 = vmatpush3.bf16.xpose.msra.mxu1 %v1270_v44  ;;  %v2500_v44 = vld [vmem:[%s3430_s14 + $0x54] ss:$8 sps:$4 sm:$0xff]  }
 0xbe8   :  { %2387 = vmatmul.mubr.msk.bf16.vlgmr.msra.gmra.mxu1 %vm468_vm4, %v1256_v40 }
 0xca8   :  { %v2388_v45 = vpop.f32.mrf.mxu1 }
 0xca9   :  { %v1318_v49 = vadd.f32 %v2388_v45, %v3036_v59  ;;  %v2110_v45 = vld [vmem:[%s3424_s8 + $0x1] ss:$0 sm:$0xff] }
 0xcaa   :  { %v1309_v46 = vpop.f32.mrf.mxu1 }
 0xcab   :  { %v1310_v47 = vadd.f32 %v1309_v46, %v3031_v58  ;;  %v1330_v41 = vsel %vm530_vm5, %v1318_v49, -inf  ;;  %v1104_v58 = vrot.slane %v2079_v5, %v3059_v23  ;;  %v2498_v46 = vld [vmem:[%s3430_s14 + $0x50] ss:$8 sps:$4 sm:$0xff]  }
 0xcac   :  { %v2389_v48 = vpop.f32.mrf.mxu1 }
 0xcad   :  { %v1324_v51 = vsel %vm530_vm5, %v1310_v47, -inf  ;;  %v1321_v54 = vadd.f32 %v2389_v48, %v3049_v2  ;;  %v1187_v59 = vadd.f32 %v1186_v10, %v1104_v58  ;;  %v1537_v48 = vmul.f32 %v2110_v45, %v3198_v28  ;;  %v2504_v28 = vld [vmem:[%s3428_s12 + $0x38] sm:$0xff]  }
 0xcae   :  { %v1312_v26 = vpop.f32.mrf.mxu1  ;;  %1325 = vmax.xlane.f32.xlu0 %v1324_v51  ;;  %v2501_v51 = vld [vmem:[%s3430_s14 + $0x40] ss:$8 sps:$4 sm:$0xff]   ;;  %2399 = vmatpush3.bf16.msra.mxu0 %v2504_v28 }
 0xcaf   :  { %v1313_v52 = vadd.f32 %v1312_v26, %v3042_v63  ;;  %v1333_v56 = vsel %vm530_vm5, %v1321_v54, -inf  ;;  %2400 = vmatprep.subr.bf16.mxu0 %v2628_v53 }
 0xcb1   :  { %v1327_v55 = vsel %vm530_vm5, %v1313_v52, -inf }
 0xcb2   :  { %1328 = vmax.xlane.f32.xlu1 %v1327_v55  ;;  %1331 = vmax.xlane.f32.xlu0 %v1330_v41  ;;  %v2506_v55 = vld [vmem:[%s3428_s12 + $0x28] sm:$0xff]   ;;  %v2508_v41 = vld [vmem:[%s3432_s16 + $0xf8] sm:$0xff]  }
 0xcb6   :  { %1334 = vmax.xlane.f32.xlu0 %v1333_v56 }
 0xcc3   :  { %1249 = vrot.lane.b32.xlu1 %v1187_v59, %s2630_s2 }
 0xd37   :  { %v1326_v22 = vpop.xlane.xlu0 %1325 }
 0xd38   :  { %v1336_v57 = vsub.f32 %v1310_v47, %v1326_v22  ;;  %v2503_v47 = vld [vmem:[%s3430_s14 + $0x44] ss:$8 sps:$4 sm:$0xff]  }
 0xd3a   :  { %v1340_v0 = vmul.f32 1.442695, %v1336_v57 }
 0xd3b   :  { %v1329_v60 = vpop.xlane.xlu1 %1328  ;;  %v1332_v63 = vpop.xlane.xlu0 %1331 }
 0xd3c   :  { %v1338_v61 = vsub.f32 %v1318_v49, %v1332_v63  ;;  %v1337_v2 = vsub.f32 %v1313_v52, %v1329_v60  ;;  %v2111_v49 = vld [vmem:[%s3425_s9 + $0x1] ss:$0 sm:$0xff] }
 0xd3d   :  { %v1544_v26 = vadd.f32 %v2111_v49, %v1537_v48 }
 0xd3e   :  { %v1344_v62 = vmul.f32 1.442695, %v1338_v61  ;;  %v1342_v6 = vmul.f32 1.442695, %v1337_v2  ;;  %v2120_v61 = vld [vmem:[%s3431_s15 + $0x2] sm:$0x3] }
 0xd3f   :  { %v1335_v1 = vpop.xlane.xlu0 %1334  ;;  %v1250_v5 = vpop.permute.xlu1 %1249  ;;  %v1554_v52 = vpack.c.bf16 %v1544_v26, %v1544_v26  ;;  %v1565_v2 = vrot.slane %v2120_v61, %v3059_v23 }
 0xd40   :  { %v1339_v4 = vsub.f32 %v1321_v54, %v1335_v1  ;;  %2560 = vpow2.f32 %v1344_v62  ;;  %v2505_v54 = vld [vmem:[%s3428_s12 + $0x30] sm:$0xff]  }
 0xd41   :  { %2562 = vpow2.f32 %v1340_v0  ;;  %2401 = vmatpush3.bf16.msra.mxu0 %v2505_v54 }
 0xd42   :  { %v1346_v17 = vmul.f32 1.442695, %v1339_v4  ;;  %2402 = vmatprep.subr.bf16.mxu0 %v2628_v53 }
 0xd44   :  { %2564 = vpow2.f32 %v1346_v17 }
 0xd45   :  { %2566 = vpow2.f32 %v1342_v6  ;;  %2403 = vmatpush3.bf16.msra.mxu0 %v2506_v55  ;;  %v2102_v55 = vld [vmem:[%s3429_s13 + $0x1] ss:$0 sm:$0xff] }
 0xd46   :  { %2404 = vmatprep.subr.bf16.mxu0 %v2628_v53 }
 0xd4d   :  { %v2561_v18 = vpop.eup %2560 }
 0xd4e   :  { %v1354_v19 = vsel %vm530_vm5, %v2561_v18, 0.0  ;;  %v2563_v21 = vpop.eup %2562 }
 0xd4f   :  { %1355 = vadd.xlane.f32.xlu1 %v1354_v19  ;;  %v1348_v31 = vsel %vm530_vm5, %v2563_v21, 0.0 }
 0xd51   :  { %v2565_v27 = vpop.eup %2564 }
 0xd52   :  { %v1357_v29 = vsel %vm530_vm5, %v2565_v27, 0.0  ;;  %v2567_v30 = vpop.eup %2566 }
 0xd53   :  { %1358 = vadd.xlane.f32.xlu0 %v1357_v29  ;;  %1349 = vadd.xlane.f32.xlu1 %v1348_v31  ;;  %v1351_v32 = vsel %vm530_vm5, %v2567_v30, 0.0 }
 0xd57   :  { %1352 = vadd.xlane.f32.xlu0 %v1351_v32 }
 0xd64   :  { %1246 = vrot.lane.b32.xlu1 %v1187_v59, %s2632_s28 }
 0xd6d   :  { %1252 = vrot.lane.b32.xlu0 %v1187_v59, %s2631_s3 }
 0xdd8   :  { %v1356_v7 = vpop.xlane.xlu1 %1355 }
 0xddc   :  { %v1359_v8 = vpop.xlane.xlu0 %1358  ;;  %v1350_v9 = vpop.xlane.xlu1 %1349 }
 0xddd   :  { %2568 = vrcp.f32 %v1359_v8 }
 0xdde   :  { %2570 = vrcp.f32 %v1350_v9 }
 0xddf   :  { %2572 = vrcp.f32 %v1356_v7 }
 0xde0   :  { %v1353_v10 = vpop.xlane.xlu0 %1352  ;;  %v1247_v11 = vpop.permute.xlu1 %1246 }
 0xde1   :  { %2574 = vrcp.f32 %v1353_v10  ;;  %v1370_v12 = vpack.c.bf16 %v1247_v11, %v1187_v59 }
 0xde4   :  { %v1253_v33 = vpop.permute.xlu0 %1252 }
 0xde5   :  { %v1371_v34 = vpack.c.bf16 %v1253_v33, %v1250_v5 }
 0xde7   :  { %2390 = vmatprep.subr.bf16.mxu1 %v1371_v34 }
 0xde8   :  { %2391 = vmatpush3.bf16.msra.mxu1 %v1371_v34 }
 0xde9   :  { %2392 = vmatprep.subr.bf16.mxu1 %v1370_v12 }
 0xdea   :  { %v2569_v35 = vpop.eup %2568 }
 0xdeb   :  { %v2571_v14 = vpop.eup %2570  ;;  %v1367_v38 = vmul.f32 %v2569_v35, %v2565_v27  ;;  %v2511_v35 = vld [vmem:[%s3432_s16 + $0xb0] sm:$0xff]  }
 0xdec   :  { %2393 = vmatpush3.bf16.msra.mxu1 %v1370_v12  ;;  %v2573_v36 = vpop.eup %2572  ;;  %v1364_v39 = vmul.f32 %v2571_v14, %v2563_v21  ;;  %v2510_v12 = vld [vmem:[%s3432_s16 + $0xf0] sm:$0xff]  }
 0xded   :  { %1619 = vmatprep.subr.bf16.mxu1 %v2494_v13  ;;  %v1366_v40 = vmul.f32 %v2573_v36, %v2561_v18  ;;  %v1561_v18 = vrot.slane %v2120_v61, %v2960_v15  ;;  %v2509_v15 = vld [vmem:[%s3432_s16 + $0xb8] sm:$0xff]   ;;  %v2512_v36 = vld [vmem:[%s3432_s16 + $0xe8] sm:$0xff]  }
 0xdee   :  { %v2575_v37 = vpop.eup %2574 }
 0xdef   :  { %v1365_v16 = vmul.f32 %v2575_v37, %v2567_v30  ;;  %v1369_v24 = vpack.c.bf16 %v1367_v38, %v1366_v40  ;;  %v2513_v37 = vld [vmem:[%s3432_s16 + $0xa8] sm:$0xff]   ;;  %v2514_v38 = vld [vmem:[%s3432_s16 + $0xe0] sm:$0xff]   ;;  %v2517_v40 = vld [vmem:[%s3432_s16 + $0x98] sm:$0xff]  }
 0xdf1   :  { %v1368_v42 = vpack.c.bf16 %v1365_v16, %v1364_v39  ;;  %v2515_v39 = vld [vmem:[%s3432_s16 + $0xa0] sm:$0xff]   ;;  %v2516_v16 = vld [vmem:[%s3432_s16 + $0xd8] sm:$0xff]  }
 0xdf3   :  { %2394 = vmatprep.mubr.msk.bf16.mxu1 %vm530_vm5, %v1368_v42  ;;  %v2518_v42 = vld [vmem:[%s3432_s16 + $0xd0] sm:$0xff]  }
 0xdf4   :  { %2395 = vmatmul.mubr.msk.bf16.vlgmr.msra.gmra.mxu1 %vm530_vm5, %v1369_v24  ;;  %v2520_v24 = vld [vmem:[%s3432_s16 + $0xc8] sm:$0xff]  }
 0xdf5   :  { %1620 = vmatpush1.bf16.msra.mxu1 %v2492_v20  ;;  %1643 = vmatprep.mubr.bf16.mxu1 %v2626_v3  ;;  %v2519_v20 = vld [vmem:[%s3432_s16 + $0x90] sm:$0xff]  }
 0xdf6   :  { %1621 = vmatprep.subr.bf16.mxu1 %v2497_v25 }
 0xdf9   :  { %1622 = vmatpush1.bf16.msra.mxu1 %v2495_v43  ;;  %v2521_v43 = vld [vmem:[%s3432_s16 + $0x88] sm:$0xff]  }
 0xdfa   :  { %1623 = vmatprep.subr.bf16.mxu1 %v2500_v44  ;;  %v2522_v44 = vld [vmem:[%s3432_s16 + $0xc0] sm:$0xff]  }
 0xdfd   :  { %1624 = vmatpush1.bf16.msra.mxu1 %v2498_v46 }
 0xdfe   :  { %1625 = vmatprep.subr.bf16.mxu1 %v2503_v47  ;;  %v2523_v47 = vld [vmem:[%s3432_s16 + $0x80] sm:$0xff]  }
 0xe01   :  { %1626 = vmatpush1.bf16.msra.mxu1 %v2501_v51 }
 0xe04   :  { %2129 = vmatmul.mubr.msk.bf16.vlgmr.msra.gmra.mxu1 %vm212_vm2, %v1554_v52 }
 0xe05   :  { %1967 = vmatprep.mubr.bf16.mxu1 %v2626_v3  ;;  %v2507_v3 = vld [vmem:[%s3428_s12 + $0x20] sm:$0xff]  }
 0xe06   :  { %2405 = vmatpush3.bf16.msra.mxu0 %v2507_v3  ;;  %v2163_v3 = vld [vmem:[%s3433_s17 + $0x1] ss:$0 sm:$0xff] }
 0xe07   :  { %2292 = vmatprep.subr.bf16.mxu0 %v2508_v41 }
 0xeb4   :  { %v2396_v56 = vpop.f32.mrf.mxu1 }
 0xeb5   :  { %1432 = vrot.lane.b32.xlu0 %v2396_v56, %s3460_s23 }
 0xeb6   :  { %v1412_v58 = vpop.f32.mrf.mxu1 }
 0xeb8   :  { %v2397_v59 = vpop.f32.mrf.mxu1 }
 0xeba   :  { %v1415_v22 = vpop.f32.mrf.mxu1 }
 0xebb   :  { %1428 = vrot.lane.b32.xlu1 %v1415_v22, %s3461_s26 }
 0xebf   :  { %1436 = vrot.lane.b32.xlu1 %v2397_v59, %s3462_s24 }
 0xec4   :  { %v1645_v53 = vpop.f32.mrf.mxu1 }
 0xec5   :  { %v1646_v19 = vadd.f32 %v1645_v53, %v1561_v18  ;;  %v2533_v18 = vld [vmem:[%s3436_s20] ss:$8 sps:$4 sm:$0xff]  }
 0xec6   :  { %v1647_v57 = vpop.f32.mrf.mxu1 }
 0xec7   :  { %v1648_v62 = vadd.f32 %v1647_v57, %v1565_v2  ;;  %v1654_v21 = vmul.f32 0.044715, %v1646_v19  ;;  %v1652_v46 = vmul.f32 0.5, %v1646_v19 }
 0xec8   :  { %v1649_v60 = vpop.f32.mrf.mxu1 }
 0xec9   :  { %v1655_v0 = vmul.f32 0.044715, %v1648_v62  ;;  %v1656_v29 = vmul.f32 %v1654_v21, %v1646_v19  ;;  %v1653_v5 = vmul.f32 0.5, %v1648_v62 }
 0xeca   :  { %v1650_v63 = vpop.f32.mrf.mxu1 }
 0xecb   :  { %v1657_v1 = vmul.f32 %v1655_v0, %v1648_v62  ;;  %v1658_v7 = vmul.f32 %v1656_v29, %v1646_v19  ;;  %v2524_v0 = vld [vmem:[%s3436_s20 + $0x30] ss:$8 sps:$4 sm:$0xff]  }
 0xecd   :  { %v1659_v4 = vmul.f32 %v1657_v1, %v1648_v62  ;;  %v1660_v33 = vadd.f32 %v1658_v7, %v1646_v19  ;;  %v2527_v1 = vld [vmem:[%s3436_s20 + $0x20] ss:$8 sps:$4 sm:$0xff]  }
 0xecf   :  { %v1661_v6 = vadd.f32 %v1659_v4, %v1648_v62  ;;  %v1662_v14 = vmul.f32 0.7978846, %v1660_v33  ;;  %v2526_v62 = vld [vmem:[%s3436_s20 + $0x34] ss:$8 sps:$4 sm:$0xff]  }
 0xed0   :  { %1943 = vmatprep.subr.bf16.mxu1 %v2526_v62  ;;  %v2532_v4 = vld [vmem:[%s3436_s20 + $0x14] ss:$8 sps:$4 sm:$0xff]  }
 0xed1   :  { %v1663_v17 = vmul.f32 0.7978846, %v1661_v6  ;;  %1944 = vmatpush1.bf16.msra.mxu1 %v2524_v0  ;;  %v2530_v6 = vld [vmem:[%s3436_s20 + $0x10] ss:$8 sps:$4 sm:$0xff]  }
 0xed3   :  { %2576 = vtanh.f32 %v1663_v17  ;;  %v2535_v17 = vld [vmem:[%s3436_s20 + $0x4] ss:$8 sps:$4 sm:$0xff]  }
 0xed4   :  { %2578 = vtanh.f32 %v1662_v14 }
 0xee0   :  { %v2577_v27 = vpop.eup %2576 }
 0xee1   :  { %v1667_v30 = vadd.f32 1.0, %v2577_v27  ;;  %v2579_v25 = vpop.eup %2578 }
 0xee2   :  { %v1666_v45 = vadd.f32 1.0, %v2579_v25 }
 0xee3   :  { %v1669_v8 = vmul.f32 %v1667_v30, %v1653_v5 }
 0xee4   :  { %v1668_v48 = vmul.f32 %v1666_v45, %v1652_v46 }
 0xee5   :  { %v1704_v13 = vpack.c.bf16 %v1669_v8, %v1669_v8 }
 0xee6   :  { %v1703_v49 = vpack.c.bf16 %v1668_v48, %v1668_v48 }
 0xf27   :  { %v1433_v23 = vpop.permute.xlu0 %1432 }
 0xf2d   :  { %v1429_v31 = vpop.permute.xlu1 %1428 }
 0xf2e   :  { %v1439_v32 = vsel %vm468_vm4, %v1412_v58, %v1429_v31 }
 0xf2f   :  { %v1440_v9 = vsel %vm530_vm5, %v1439_v32, %v1433_v23  ;;  %v2180_v23 = vld [vmem:[%s3434_s18] ss:$0 sm:$0xff] }
 0xf31   :  { %v1437_v10 = vpop.permute.xlu1 %1436 }
 0xf32   :  { %v1441_v11 = vsel %vm648_vm6, %v1440_v9, %v1437_v10  ;;  %v2181_v9 = vld [vmem:[%s3435_s19] ss:$0 sm:$0xff] }
 0xf33   :  { %v1451_v34 = vpack.c.bf16 %v1441_v11, %v1441_v11 }
 0xf35   :  { %2407 = vmatmul.mubr.msk.bf16.vlgmr.msra.gmra.mxu0 %vm212_vm2, %v1451_v34 }
 0xf36   :  { %2293 = vmatpush3.bf16.msra.mxu0 %v2509_v15  ;;  %1841 = vmatprep.mubr.bf16.mxu0 %v1704_v13 }
 0xf37   :  { %2294 = vmatprep.subr.bf16.mxu0 %v2510_v12 }
 0xf3a   :  { %2295 = vmatpush3.bf16.msra.mxu0 %v2511_v35 }
 0xf3b   :  { %2296 = vmatprep.subr.bf16.mxu0 %v2512_v36 }
 0xf3e   :  { %2297 = vmatpush3.bf16.msra.mxu0 %v2513_v37 }
 0xf3f   :  { %2298 = vmatprep.subr.bf16.mxu0 %v2514_v38 }
 0xf42   :  { %2299 = vmatpush3.bf16.msra.mxu0 %v2515_v39 }
 0xf43   :  { %2300 = vmatprep.subr.bf16.mxu0 %v2516_v16 }
 0xf46   :  { %2301 = vmatpush3.bf16.msra.mxu0 %v2517_v40 }
 0xf47   :  { %2302 = vmatprep.subr.bf16.mxu0 %v2518_v42 }
 0xf4a   :  { %2303 = vmatpush3.bf16.msra.mxu0 %v2519_v20 }
 0xf4b   :  { %2304 = vmatprep.subr.bf16.mxu0 %v2520_v24 }
 0xf4e   :  { %2305 = vmatpush3.bf16.msra.mxu0 %v2521_v43 }
 0xf4f   :  { %2306 = vmatprep.subr.bf16.mxu0 %v2522_v44 }
 0xf52   :  { %2307 = vmatpush3.bf16.msra.mxu0 %v2523_v47 }
 0xf55   :  { %1842 = vmatmul.mubr.bf16.vlgmr.msra.gmra.mxu0 %v1703_v49 }
 0xff5   :  { %v1521_v51 = vpop.f32.mrf.mxu0 }
 0xff6   :  { %v1522_v59 = vadd.f32 %v2102_v55, %v1521_v51 }
 0xff7   :  { %v2408_v26 = vpop.f32.mrf.mxu0 }
 0xff9   :  { %v1524_v52 = vpop.f32.mrf.mxu0 }
 0xffb   :  { %v2409_v28 = vpop.f32.mrf.mxu0 }
0x1015   :  { %v2308_v54 = vpop.f32.mrf.mxu0 }
0x1017   :  { %v2309_v41 = vpop.f32.mrf.mxu0 }
0x1018   :  { %v2310_v56 = vadd.f32 %v2309_v41, %v2308_v54 }
0x1019   :  { %v2311_v58 = vpop.f32.mrf.mxu0 }
0x101a   :  { %v1844_v22 = vadd.f32 %v2310_v56, %v2163_v3 }
0x101b   :  { %v2312_v53 = vpop.f32.mrf.mxu0 }
0x101c   :  { %v1849_v57 = vadd.f32 %v1844_v22, %v1522_v59 }
0x101e   :  { %v1850_v60 = vadd.f32 %v1849_v57, %v3162_v50  ;;  %v2529_v50 = vld [vmem:[%s3436_s20 + $0x24] ss:$8 sps:$4 sm:$0xff]   ;;  %s2637_s20 = smov [#allocation2]  }
0x101f   :  { %1945 = vmatprep.subr.bf16.mxu1 %v2529_v50  ;;  %s1984_s27 = sshll.u32 %s2637_s20, 4  ;;  %s1985_s27 = int_to_ptr.vmem [resolvable:$true] %s1984_s27 }
0x1020   :  { %v1853_v63 = vsel %vm212_vm2, %v1850_v60, 0.0  ;;  %v1857_v61 = vmul.f32 %v1850_v60, %v1850_v60  ;;  %1946 = vmatpush1.bf16.msra.mxu1 %v2527_v1  ;;  %s2582_s11 = scalar_lea.vmem %s1985_s27, 128  ;;  %p2587_p1 = scmp.lt.s32.totalorder %s1985_s27, %s1985_s27 }
0x1021   :  { %1854 = vadd.xlane.f32.xlu0 %v1853_v63  ;;  %1947 = vmatprep.subr.bf16.mxu1 %v2532_v4  ;;  %p2583_p0 = scmp.ne.s32.totalorder %s1985_s27, %s2582_s11  ;;  %p2588_p2 = scmp.lt.s32.totalorder %s2582_s11, %s2582_s11 }
0x1022   :  { %v1858_v2 = vsel %vm212_vm2, %v1857_v61, 0.0 }
0x1023   :  { %1859 = vadd.xlane.f32.xlu1 %v1858_v2  ;;  %p2589_p3 = por %p2588_p2, %p2587_p1 }
0x1024   :  { %1948 = vmatpush1.bf16.msra.mxu1 %v2530_v6 }
0x1025   :  { %1949 = vmatprep.subr.bf16.mxu1 %v2535_v17  ;;  %p2590_p4 = pnand %p2589_p3, %p2583_p0 }
0x1028   :  { %1950 = vmatpush1.bf16.msra.mxu1 %v2533_v18 }
0x10aa   :  { %v1855_v19 = vpop.xlane.xlu0 %1854 }
0x10ab   :  { %v1856_v21 = vmul.f32 0.015625, %v1855_v19 }
0x10ac   :  { %v1860_v27 = vpop.xlane.xlu1 %1859 }
0x10ad   :  { %v1862_v29 = vmul.f32 %v1856_v21, %v1856_v21  ;;  %v1861_v30 = vmul.f32 0.015625, %v1860_v27  ;;  %v1864_v5 = vsub.f32 %v1850_v60, %v1856_v21 }
0x10af   :  { %v1863_v31 = vsub.f32 %v1861_v30, %v1862_v29 }
0x10b1   :  { %v1865_v32 = vadd.f32 1e-05, %v1863_v31 }
0x10b3   :  { %2580 = vrsqrt.f32 %v1865_v32 }
0x10c0   :  { %v2581_v7 = vpop.eup %2580 }
0x10c1   :  { %v1867_v8 = vmul.f32 %v2581_v7, %v1864_v5 }
0x10c3   :  { %v1874_v10 = vmul.f32 %v2180_v23, %v1867_v8 }
0x10c5   :  { %v1881_v11 = vadd.f32 %v2181_v9, %v1874_v10 }
0x10c7   :  { %v1891_v15 = vpack.c.bf16 %v1881_v11, %v1881_v11  ;;  %1882 = vst.msk [vmem:[#allocation2] sm:$0xff] %vm212_vm2, %v1881_v11 }
0x10c9   :  { %2190 = vmatmul.mubr.msk.bf16.vlgmr.msra.gmra.mxu1 %vm212_vm2, %v1891_v15 }
0x10ca   :  { %2593 = shalt.err (!%p2590_p4)
}
0x10cb   :  { %1987 = dma.vmem_to_hbm [thread:$0]  %s1985_s27, 128, %s3437_s21, [#allocation3]  }
0x10cc   :  { %s2638_s19 = smov [#allocation4]  }
0x10cd   :  { %s1994_s8 = sshll.u32 %s2638_s19, 4  ;;  %s1995_s8 = int_to_ptr.vmem [resolvable:$true] %s1994_s8 }
0x10ce   :  { %s2602_s3 = scalar_lea.vmem %s1995_s8, 256  ;;  %p2607_p6 = scmp.lt.s32.totalorder %s1995_s8, %s1995_s8 }
0x10cf   :  { %p2603_p5 = scmp.ne.s32.totalorder %s1995_s8, %s2602_s3  ;;  %p2608_p7 = scmp.lt.s32.totalorder %s2602_s3, %s2602_s3 }
0x10d1   :  { %p2609_p8 = por %p2608_p7, %p2607_p6 }
0x10d3   :  { %p2610_p9 = pnand %p2609_p8, %p2603_p5 }
0x1189   :  { %v1969_v33 = vpop.f32.mrf.mxu1 }
0x118a   :  { %1976 = vst [vmem:[#allocation4] sm:$0xff] %v1969_v33 }
0x118b   :  { %v1971_v34 = vpop.f32.mrf.mxu1 }
0x118c   :  { %1977 = vst [vmem:[#allocation4 + $0x8] sm:$0xff] %v1971_v34 }
0x118d   :  { %v1973_v12 = vpop.f32.mrf.mxu1 }
0x118e   :  { %2613 = shalt.err (!%p2610_p9)
}
0x118f   :  { %1997 = dma.vmem_to_hbm [thread:$0]  %s1995_s8, 256, %s3438_s22, [#allocation5]   ;;  %v1974_v13 = vpop.f32.mrf.mxu1 }
0x1190   :  { %2622 = dma.done.wait [#allocation3], 128  }
0x1191   :  { %2623 = vsyncadd [#allocation3], 4294967168 }
0x1192   :  { %2624 = dma.done.wait [#allocation5], 256  }
0x1193   :  { %2625 = vsyncadd [#allocation5], 4294967040 }
0x1194   :  { %2004 = vsyncpa [#allocation3], 1 }
0x1195   :  { %2005 = vsyncpa [#allocation5], 1 }

</bundles_post_ra>
